<compile_context>
chip_gen: v7x
topology: tpu7x:2x2x1
jax: 0.10.0
libtpu: 0.0.40
codegen_flags: <defaults>
</compile_context>

<pallas_src>
import jax
import jax.numpy as jnp
from jax import lax
from jax.experimental import pallas as pl
from jax.experimental.pallas import tpu as pltpu


def _flash_oc_kernel(xq_ref, xkv_ref, wk_ref, bk_ref, wv_ref, bv_ref, ww_ref,
                     bw_ref, o_ref, keyq_sc, m_sc, l_sc, acc_sc):
    ki = pl.program_id(2)
    nk = pl.num_programs(2)

    @pl.when(ki == 0)
    def _():
        # Project this query tile once per (batch, q-tile); scale already folded
        # into wk/bk by the wrapper.
        xq = xq_ref[0]                                                 # (tq, C)
        kq = jnp.dot(xq, wk_ref[...],
                     preferred_element_type=jnp.float32) + bk_ref[...]
        keyq_sc[...] = kq.astype(keyq_sc.dtype)                        # bf16
        m_sc[...] = jnp.full_like(m_sc, -jnp.inf)
        l_sc[...] = jnp.zeros_like(l_sc)
        acc_sc[...] = jnp.zeros_like(acc_sc)

    # Projections for the current kv tile (C is small; keep these in f32).
    xkv = xkv_ref[0]                                                   # (tkv, C)
    kkv = jnp.dot(xkv, wk_ref[...],
                  preferred_element_type=jnp.float32) + bk_ref[...]    # (tkv, Kp)
    vkv = jnp.dot(xkv, wv_ref[...],
                  preferred_element_type=jnp.float32) + bv_ref[...]    # (tkv, Vp)

    # sim tile: contract both operands over their last (key-channel) dim.
    sim = lax.dot_general(
        keyq_sc[...], kkv.astype(jnp.bfloat16),
        dimension_numbers=(((1,), (1,)), ((), ())),
        preferred_element_type=jnp.float32)                            # (tq, tkv)

    # Online softmax update.
    m_new = jnp.maximum(m_sc[...], jnp.max(sim, axis=-1, keepdims=True))
    alpha = jnp.exp(m_sc[...] - m_new)
    p = jnp.exp(sim - m_new)
    l_sc[...] = alpha * l_sc[...] + jnp.sum(p, axis=-1, keepdims=True)
    acc_sc[...] = alpha * acc_sc[...] + jnp.dot(
        p.astype(jnp.bfloat16), vkv.astype(jnp.bfloat16),
        preferred_element_type=jnp.float32)
    m_sc[...] = m_new

    @pl.when(ki == nk - 1)
    def _():
        ctx = acc_sc[...] * pl.reciprocal(l_sc[...], approx=True)      # (tq, Vp)
        out = jnp.dot(ctx, ww_ref[...],
                      preferred_element_type=jnp.float32) + bw_ref[...]
        o_ref[0] = out.astype(o_ref.dtype)


def _round_up(n, m):
    return ((n + m - 1) // m) * m


def _pad_to(a, axis, size):
    pad = size - a.shape[axis]
    if pad == 0:
        return a
    widths = [(0, 0)] * a.ndim
    widths[axis] = (0, pad)
    return jnp.pad(a, widths)


def _pick_tile(hw, target):
    """Largest divisor of hw that is <= target and legal as a 2nd-minor block dim."""
    if hw <= target:
        return hw
    for t in range(min(target, hw), 0, -1):
        if hw % t == 0 and (t % 8 == 0 or t == hw):
            return t
    return hw


def base_oc_context_forward(x_nchw, params, *, tile_q=256, tile_kv=512):
    """x_nchw: (N, C, H, W) float32. Returns (N, out_channels, H, W)."""
    N, C, H, W = x_nchw.shape
    HW = H * W

    # --- glue: NCHW -> (N, HW, C) ---
    x_tok = jnp.transpose(x_nchw.reshape(N, C, HW), (0, 2, 1))         # (N, HW, C)

    # --- glue: fold BN into f_key and fold the softmax scale into the key
    # projection (query and key share the projection, so K**-0.25 on each side
    # gives the required K**-0.5 on the similarity). Weights laid out (C_in, C_out).
    wk, bk = params["f_key_w"], params["f_key_b"]                      # (K, C), (K,)
    gamma, beta = params["bn_gamma"], params["bn_beta"]
    mean, var, eps = params["bn_mean"], params["bn_var"], 1e-5
    K = wk.shape[0]
    bn_scale = gamma / jnp.sqrt(var + eps)                             # (K,)
    qk_scale = float(K) ** -0.25
    wk_f = (wk * bn_scale[:, None]).T * qk_scale                       # (C, K)
    bk_f = (((bk - mean) * bn_scale + beta) * qk_scale)[None, :]       # (1, K)

    wv_f = params["f_value_w"].T                                       # (C, V)
    bv_f = params["f_value_b"][None, :]                                # (1, V)
    ww_f = params["W_w"].T                                             # (V, O)
    bw_f = params["W_b"][None, :]                                      # (1, O)

    V = wv_f.shape[1]
    O = ww_f.shape[1]

    # --- lane-dense channel padding (zero-pad K/V/O up to multiples of 128) ---
    Kp = _round_up(K, 128)
    Vp = _round_up(V, 128)
    Op = _round_up(O, 128)
    wk_f = _pad_to(wk_f, 1, Kp)
    bk_f = _pad_to(bk_f, 1, Kp)
    wv_f = _pad_to(wv_f, 1, Vp)
    bv_f = _pad_to(bv_f, 1, Vp)
    ww_f = _pad_to(_pad_to(ww_f, 0, Vp), 1, Op)
    bw_f = _pad_to(bw_f, 1, Op)

    tq = _pick_tile(HW, tile_q)
    tkv = _pick_tile(HW, tile_kv)
    grid = (N, HW // tq, HW // tkv)

    const2 = lambda shape: pl.BlockSpec(shape, lambda b, qi, ki: (0, 0))

    out_tok = pl.pallas_call(
        _flash_oc_kernel,
        out_shape=jax.ShapeDtypeStruct((N, HW, Op), jnp.float32),
        grid_spec=pltpu.PrefetchScalarGridSpec(
            num_scalar_prefetch=0,
            grid=grid,
            in_specs=[
                pl.BlockSpec((1, tq, C), lambda b, qi, ki: (b, qi, 0)),   # x: q tiles
                pl.BlockSpec((1, tkv, C), lambda b, qi, ki: (b, ki, 0)),  # x: kv tiles
                const2((C, Kp)), const2((1, Kp)),                         # key proj (BN+scale folded)
                const2((C, Vp)), const2((1, Vp)),                         # value proj
                const2((Vp, Op)), const2((1, Op)),                        # final W proj
            ],
            out_specs=pl.BlockSpec((1, tq, Op), lambda b, qi, ki: (b, qi, 0)),
            scratch_shapes=[
                pltpu.VMEM((tq, Kp), jnp.bfloat16),   # cached query-tile key
                pltpu.VMEM((tq, 1), jnp.float32),     # running max m
                pltpu.VMEM((tq, 1), jnp.float32),     # running denom l
                pltpu.VMEM((tq, Vp), jnp.float32),    # running context acc
            ],
        ),
        compiler_params=pltpu.CompilerParams(
            dimension_semantics=("parallel", "parallel", "arbitrary"),
            vmem_limit_bytes=48 * 1024 * 1024,
        ),
    )(x_tok, x_tok, wk_f, bk_f, wv_f, bv_f, ww_f, bw_f)

    # --- glue: drop channel padding, (N, HW, O) -> NCHW ---
    out_tok = out_tok[..., :O]
    return jnp.transpose(out_tok, (0, 2, 1)).reshape(N, O, H, W)


def _reference_forward(x_nchw, params):
    """Pure-JAX f32 reference of the same math, for verification."""
    N, C, H, W = x_nchw.shape
    HW = H * W
    x_tok = jnp.transpose(x_nchw.reshape(N, C, HW), (0, 2, 1))
    gamma, beta = params["bn_gamma"], params["bn_beta"]
    mean, var, eps = params["bn_mean"], params["bn_var"], 1e-5
    bn_scale = gamma / jnp.sqrt(var + eps)
    key = jnp.einsum("nhc,kc->nhk", x_tok, params["f_key_w"]) + params["f_key_b"]
    key = (key - mean) * bn_scale + beta
    value = jnp.einsum("nhc,vc->nhv", x_tok, params["f_value_w"]) + params["f_value_b"]
    K = key.shape[-1]
    sim = jnp.einsum("nik,njk->nij", key, key) * (K ** -0.5)
    sim = jax.nn.softmax(sim, axis=-1)
    ctx = jnp.einsum("nij,njv->niv", sim, value)
    out = jnp.einsum("niv,ov->nio", ctx, params["W_w"]) + params["W_b"]
    return jnp.transpose(out, (0, 2, 1)).reshape(N, -1, H, W)


if __name__ == "__main__":
    # Small shapes consistent with the module's forward.
    N, C, H, W = 2, 8, 16, 16
    key_channels, value_channels, out_channels = 4, 8, 8

    root = jax.random.PRNGKey(0)
    ks = jax.random.split(root, 8)

    params = {
        "f_key_w": 0.1 * jax.random.normal(ks[0], (key_channels, C), jnp.float32),
        "f_key_b": 0.1 * jax.random.normal(ks[1], (key_channels,), jnp.float32),
        "bn_gamma": jnp.ones((key_channels,), jnp.float32),
        "bn_beta": jnp.zeros((key_channels,), jnp.float32),
        "bn_mean": jnp.zeros((key_channels,), jnp.float32),
        "bn_var": jnp.ones((key_channels,), jnp.float32),
        "f_value_w": 0.1 * jax.random.normal(ks[2], (value_channels, C), jnp.float32),
        "f_value_b": 0.1 * jax.random.normal(ks[3], (value_channels,), jnp.float32),
        # PyTorch __init__ zero-inits W; use deterministic random values so the
        # kernel's compute path is non-trivial (see NOTE at top).
        "W_w": 0.1 * jax.random.normal(ks[4], (out_channels, value_channels), jnp.float32),
        "W_b": 0.1 * jax.random.normal(ks[5], (out_channels,), jnp.float32),
    }

    x = jax.random.normal(ks[6], (N, C, H, W), jnp.float32)

    # Small tiles so the toy run exercises multiple query tiles AND multiple
    # online-softmax kv steps (grid = (2, 2, 2)). Production defaults are
    # tile_q=256 / tile_kv=512 (fits the v7x 64 MiB VMEM budget).
    out = base_oc_context_forward(x, params, tile_q=128, tile_kv=128)
    out = jax.block_until_ready(out)

    ref = jax.block_until_ready(_reference_forward(x, params))
    assert out.shape == (N, out_channels, H, W)
    # bf16 MXU inputs + approx reciprocal => loosen tolerance vs f32 reference.
    assert jnp.allclose(out, ref, atol=2e-2, rtol=2e-2), "mismatch vs reference"

    print("KERNEL_OK")
</pallas_src>

<mosaic_0001>
module attributes {stable_mosaic.version = 11 : i64} {
  func.func @_flash_oc_kernel(%arg0: i32, %arg1: i32, %arg2: i32, %arg3: memref<1x128x8xf32, #tpu.memory_space<vmem>>, %arg4: memref<1x128x8xf32, #tpu.memory_space<vmem>>, %arg5: memref<8x128xf32, #tpu.memory_space<vmem>>, %arg6: memref<1x128xf32, #tpu.memory_space<vmem>>, %arg7: memref<8x128xf32, #tpu.memory_space<vmem>>, %arg8: memref<1x128xf32, #tpu.memory_space<vmem>>, %arg9: memref<128x128xf32, #tpu.memory_space<vmem>>, %arg10: memref<1x128xf32, #tpu.memory_space<vmem>>, %arg11: memref<1x128x128xf32, #tpu.memory_space<vmem>>, %arg12: memref<128x128xbf16, #tpu.memory_space<vmem>>, %arg13: memref<128x1xf32, #tpu.memory_space<vmem>>, %arg14: memref<128x1xf32, #tpu.memory_space<vmem>>, %arg15: memref<128x128xf32, #tpu.memory_space<vmem>>) attributes {dimension_semantics = [#tpu.dimension_semantics<parallel>, #tpu.dimension_semantics<parallel>, #tpu.dimension_semantics<arbitrary>], iteration_bounds = array<i64: 2, 2, 2>, scalar_prefetch = 0 : i64, scratch_operands = 4 : i64, tpu.core_type = #tpu.core_type<tc>, window_params = [{transform_indices = @transform_0, window_bounds = array<i64: 1, 128, 8>}, {transform_indices = @transform_1, window_bounds = array<i64: 1, 128, 8>}, {pipeline_mode = #tpu.pipeline_mode<synchronous>, transform_indices = @transform_2, window_bounds = array<i64: 8, 128>}, {pipeline_mode = #tpu.pipeline_mode<synchronous>, transform_indices = @transform_3, window_bounds = array<i64: 1, 128>}, {pipeline_mode = #tpu.pipeline_mode<synchronous>, transform_indices = @transform_4, window_bounds = array<i64: 8, 128>}, {pipeline_mode = #tpu.pipeline_mode<synchronous>, transform_indices = @transform_5, window_bounds = array<i64: 1, 128>}, {pipeline_mode = #tpu.pipeline_mode<synchronous>, transform_indices = @transform_6, window_bounds = array<i64: 128, 128>}, {pipeline_mode = #tpu.pipeline_mode<synchronous>, transform_indices = @transform_7, window_bounds = array<i64: 1, 128>}, {transform_indices = @transform_8, window_bounds = array<i64: 1, 128, 128>}]} {
    %c0_i32 = arith.constant 0 : i32
    %0 = arith.cmpi eq, %arg2, %c0_i32 : i32
    %1 = arith.extui %0 : i1 to i32
    %c0_i32_0 = arith.constant 0 : i32
    %2 = arith.cmpi ne, %1, %c0_i32_0 : i32
    scf.if %2 {
      %c0_33 = arith.constant 0 : index
      %c0_34 = arith.constant 0 : index
      %c0_35 = arith.constant 0 : index
      %46 = vector.load %arg3[%c0_33, %c0_34, %c0_35] : memref<1x128x8xf32, #tpu.memory_space<vmem>>, vector<1x128x8xf32>
      %47 = vector.shape_cast %46 : vector<1x128x8xf32> to vector<128x8xf32>
      %c0_36 = arith.constant 0 : index
      %c0_37 = arith.constant 0 : index
      %48 = vector.load %arg5[%c0_36, %c0_37] : memref<8x128xf32, #tpu.memory_space<vmem>>, vector<8x128xf32>
      %cst_38 = arith.constant dense<0.000000e+00> : vector<128x128xf32>
      %49 = tpu.matmul %47, %48, %cst_38 {dimension_numbers = #tpu.dot_dimension_numbers<[1], [0], [0], [1], [0, 0, 1, 1], [], []>} : vector<128x8xf32>, vector<8x128xf32>, vector<128x128xf32> -> vector<128x128xf32>
      %c0_39 = arith.constant 0 : index
      %c0_40 = arith.constant 0 : index
      %50 = vector.load %arg6[%c0_39, %c0_40] : memref<1x128xf32, #tpu.memory_space<vmem>>, vector<1x128xf32>
      %51 = vector.broadcast %50 : vector<1x128xf32> to vector<128x128xf32>
      %52 = arith.addf %49, %51 : vector<128x128xf32>
      %53 = arith.truncf %52 : vector<128x128xf32> to vector<128x128xbf16>
      %c0_41 = arith.constant 0 : index
      %c0_42 = arith.constant 0 : index
      %54 = vector.load %arg12[%c0_41, %c0_42] : memref<128x128xbf16, #tpu.memory_space<vmem>>, vector<128x128xbf16>
      tpu.vector_store %arg12[%c0_41, %c0_42], %53 {strides = array<i32>} : memref<128x128xbf16, #tpu.memory_space<vmem>>, vector<128x128xbf16>,
      %cst_43 = arith.constant 0xFF800000 : f32
      %55 = vector.broadcast %cst_43 : f32 to vector<128x1xf32>
      %c0_44 = arith.constant 0 : index
      %c0_45 = arith.constant 0 : index
      %56 = vector.load %arg13[%c0_44, %c0_45] : memref<128x1xf32, #tpu.memory_space<vmem>>, vector<128x1xf32>
      tpu.vector_store %arg13[%c0_44, %c0_45], %55 {strides = array<i32>} : memref<128x1xf32, #tpu.memory_space<vmem>>, vector<128x1xf32>,
      %cst_46 = arith.constant 0.000000e+00 : f32
      %57 = vector.broadcast %cst_46 : f32 to vector<128x1xf32>
      %c0_47 = arith.constant 0 : index
      %c0_48 = arith.constant 0 : index
      %58 = vector.load %arg14[%c0_47, %c0_48] : memref<128x1xf32, #tpu.memory_space<vmem>>, vector<128x1xf32>
      tpu.vector_store %arg14[%c0_47, %c0_48], %57 {strides = array<i32>} : memref<128x1xf32, #tpu.memory_space<vmem>>, vector<128x1xf32>,
      %cst_49 = arith.constant 0.000000e+00 : f32
      %59 = vector.broadcast %cst_49 : f32 to vector<128x128xf32>
      %c0_50 = arith.constant 0 : index
      %c0_51 = arith.constant 0 : index
      %60 = vector.load %arg15[%c0_50, %c0_51] : memref<128x128xf32, #tpu.memory_space<vmem>>, vector<128x128xf32>
      tpu.vector_store %arg15[%c0_50, %c0_51], %59 {strides = array<i32>} : memref<128x128xf32, #tpu.memory_space<vmem>>, vector<128x128xf32>,
    } else {
    }
    %c0 = arith.constant 0 : index
    %c0_1 = arith.constant 0 : index
    %c0_2 = arith.constant 0 : index
    %3 = vector.load %arg4[%c0, %c0_1, %c0_2] : memref<1x128x8xf32, #tpu.memory_space<vmem>>, vector<1x128x8xf32>
    %4 = vector.shape_cast %3 : vector<1x128x8xf32> to vector<128x8xf32>
    %c0_3 = arith.constant 0 : index
    %c0_4 = arith.constant 0 : index
    %5 = vector.load %arg5[%c0_3, %c0_4] : memref<8x128xf32, #tpu.memory_space<vmem>>, vector<8x128xf32>
    %cst = arith.constant dense<0.000000e+00> : vector<128x128xf32>
    %6 = tpu.matmul %4, %5, %cst {dimension_numbers = #tpu.dot_dimension_numbers<[1], [0], [0], [1], [0, 0, 1, 1], [], []>} : vector<128x8xf32>, vector<8x128xf32>, vector<128x128xf32> -> vector<128x128xf32>
    %c0_5 = arith.constant 0 : index
    %c0_6 = arith.constant 0 : index
    %7 = vector.load %arg6[%c0_5, %c0_6] : memref<1x128xf32, #tpu.memory_space<vmem>>, vector<1x128xf32>
    %8 = vector.broadcast %7 : vector<1x128xf32> to vector<128x128xf32>
    %9 = arith.addf %6, %8 : vector<128x128xf32>
    %c0_7 = arith.constant 0 : index
    %c0_8 = arith.constant 0 : index
    %10 = vector.load %arg7[%c0_7, %c0_8] : memref<8x128xf32, #tpu.memory_space<vmem>>, vector<8x128xf32>
    %cst_9 = arith.constant dense<0.000000e+00> : vector<128x128xf32>
    %11 = tpu.matmul %4, %10, %cst_9 {dimension_numbers = #tpu.dot_dimension_numbers<[1], [0], [0], [1], [0, 0, 1, 1], [], []>} : vector<128x8xf32>, vector<8x128xf32>, vector<128x128xf32> -> vector<128x128xf32>
    %c0_10 = arith.constant 0 : index
    %c0_11 = arith.constant 0 : index
    %12 = vector.load %arg8[%c0_10, %c0_11] : memref<1x128xf32, #tpu.memory_space<vmem>>, vector<1x128xf32>
    %13 = vector.broadcast %12 : vector<1x128xf32> to vector<128x128xf32>
    %14 = arith.addf %11, %13 : vector<128x128xf32>
    %c0_12 = arith.constant 0 : index
    %c0_13 = arith.constant 0 : index
    %15 = vector.load %arg12[%c0_12, %c0_13] : memref<128x128xbf16, #tpu.memory_space<vmem>>, vector<128x128xbf16>
    %16 = arith.truncf %9 : vector<128x128xf32> to vector<128x128xbf16>
    %cst_14 = arith.constant dense<0.000000e+00> : vector<128x128xf32>
    %17 = tpu.matmul %15, %16, %cst_14 {dimension_numbers = #tpu.dot_dimension_numbers<[1], [1], [0], [0], [0, 0, 1, 0], [], []>} : vector<128x128xbf16>, vector<128x128xbf16>, vector<128x128xf32> -> vector<128x128xf32>
    %c0_15 = arith.constant 0 : index
    %c0_16 = arith.constant 0 : index
    %18 = vector.load %arg13[%c0_15, %c0_16] : memref<128x1xf32, #tpu.memory_space<vmem>>, vector<128x1xf32>
    %cst_17 = arith.constant dense<0xFF800000> : vector<128xf32>
    %19 = vector.multi_reduction <maximumf>, %17, %cst_17 [1] : vector<128x128xf32> to vector<128xf32>
    %20 = vector.shape_cast %19 : vector<128xf32> to vector<128x1xf32>
    %21 = arith.maximumf %18, %20 : vector<128x1xf32>
    %c0_18 = arith.constant 0 : index
    %c0_19 = arith.constant 0 : index
    %22 = vector.load %arg13[%c0_18, %c0_19] : memref<128x1xf32, #tpu.memory_space<vmem>>, vector<128x1xf32>
    %23 = arith.subf %22, %21 : vector<128x1xf32>
    %24 = math.exp %23 : vector<128x1xf32>
    %25 = vector.broadcast %21 : vector<128x1xf32> to vector<128x128xf32>
    %26 = arith.subf %17, %25 : vector<128x128xf32>
    %27 = math.exp %26 : vector<128x128xf32>
    %c0_20 = arith.constant 0 : index
    %c0_21 = arith.constant 0 : index
    %28 = vector.load %arg14[%c0_20, %c0_21] : memref<128x1xf32, #tpu.memory_space<vmem>>, vector<128x1xf32>
    %29 = arith.mulf %24, %28 : vector<128x1xf32>
    %cst_22 = arith.constant dense<0.000000e+00> : vector<128xf32>
    %30 = vector.multi_reduction <add>, %27, %cst_22 [1] : vector<128x128xf32> to vector<128xf32>
    %31 = vector.shape_cast %30 : vector<128xf32> to vector<128x1xf32>
    %32 = arith.addf %29, %31 : vector<128x1xf32>
    %c0_23 = arith.constant 0 : index
    %c0_24 = arith.constant 0 : index
    %33 = vector.load %arg14[%c0_23, %c0_24] : memref<128x1xf32, #tpu.memory_space<vmem>>, vector<128x1xf32>
    tpu.vector_store %arg14[%c0_23, %c0_24], %32 {strides = array<i32>} : memref<128x1xf32, #tpu.memory_space<vmem>>, vector<128x1xf32>,
    %c0_25 = arith.constant 0 : index
    %c0_26 = arith.constant 0 : index
    %34 = vector.load %arg15[%c0_25, %c0_26] : memref<128x128xf32, #tpu.memory_space<vmem>>, vector<128x128xf32>
    %35 = vector.broadcast %24 : vector<128x1xf32> to vector<128x128xf32>
    %36 = arith.mulf %35, %34 : vector<128x128xf32>
    %37 = arith.truncf %27 : vector<128x128xf32> to vector<128x128xbf16>
    %38 = arith.truncf %14 : vector<128x128xf32> to vector<128x128xbf16>
    %cst_27 = arith.constant dense<0.000000e+00> : vector<128x128xf32>
    %39 = tpu.matmul %37, %38, %cst_27 {dimension_numbers = #tpu.dot_dimension_numbers<[1], [0], [0], [1], [0, 0, 1, 1], [], []>} : vector<128x128xbf16>, vector<128x128xbf16>, vector<128x128xf32> -> vector<128x128xf32>
    %40 = arith.addf %36, %39 : vector<128x128xf32>
    %c0_28 = arith.constant 0 : index
    %c0_29 = arith.constant 0 : index
    %41 = vector.load %arg15[%c0_28, %c0_29] : memref<128x128xf32, #tpu.memory_space<vmem>>, vector<128x128xf32>
    tpu.vector_store %arg15[%c0_28, %c0_29], %40 {strides = array<i32>} : memref<128x128xf32, #tpu.memory_space<vmem>>, vector<128x128xf32>,
    %c0_30 = arith.constant 0 : index
    %c0_31 = arith.constant 0 : index
    %42 = vector.load %arg13[%c0_30, %c0_31] : memref<128x1xf32, #tpu.memory_space<vmem>>, vector<128x1xf32>
    tpu.vector_store %arg13[%c0_30, %c0_31], %21 {strides = array<i32>} : memref<128x1xf32, #tpu.memory_space<vmem>>, vector<128x1xf32>,
    %c1_i32 = arith.constant 1 : i32
    %43 = arith.cmpi eq, %arg2, %c1_i32 : i32
    %44 = arith.extui %43 : i1 to i32
    %c0_i32_32 = arith.constant 0 : i32
    %45 = arith.cmpi ne, %44, %c0_i32_32 : i32
    scf.if %45 {
      %c0_33 = arith.constant 0 : index
      %c0_34 = arith.constant 0 : index
      %46 = vector.load %arg15[%c0_33, %c0_34] : memref<128x128xf32, #tpu.memory_space<vmem>>, vector<128x128xf32>
      %c0_35 = arith.constant 0 : index
      %c0_36 = arith.constant 0 : index
      %47 = vector.load %arg14[%c0_35, %c0_36] : memref<128x1xf32, #tpu.memory_space<vmem>>, vector<128x1xf32>
      %48 = tpu.reciprocal %47 {approx = true} : vector<128x1xf32> -> vector<128x1xf32>
      %49 = vector.broadcast %48 : vector<128x1xf32> to vector<128x128xf32>
      %50 = arith.mulf %46, %49 : vector<128x128xf32>
      %c0_37 = arith.constant 0 : index
      %c0_38 = arith.constant 0 : index
      %51 = vector.load %arg9[%c0_37, %c0_38] : memref<128x128xf32, #tpu.memory_space<vmem>>, vector<128x128xf32>
      %cst_39 = arith.constant dense<0.000000e+00> : vector<128x128xf32>
      %52 = tpu.matmul %50, %51, %cst_39 {dimension_numbers = #tpu.dot_dimension_numbers<[1], [0], [0], [1], [0, 0, 1, 1], [], []>} : vector<128x128xf32>, vector<128x128xf32>, vector<128x128xf32> -> vector<128x128xf32>
      %c0_40 = arith.constant 0 : index
      %c0_41 = arith.constant 0 : index
      %53 = vector.load %arg10[%c0_40, %c0_41] : memref<1x128xf32, #tpu.memory_space<vmem>>, vector<1x128xf32>
      %54 = vector.broadcast %53 : vector<1x128xf32> to vector<128x128xf32>
      %55 = arith.addf %52, %54 : vector<128x128xf32>
      %c0_42 = arith.constant 0 : index
      %c0_43 = arith.constant 0 : index
      %c0_44 = arith.constant 0 : index
      %56 = vector.load %arg11[%c0_42, %c0_43, %c0_44] : memref<1x128x128xf32, #tpu.memory_space<vmem>>, vector<1x128x128xf32>
      %57 = vector.shape_cast %56 : vector<1x128x128xf32> to vector<128x128xf32>
      %58 = vector.shape_cast %55 : vector<128x128xf32> to vector<1x128x128xf32>
      tpu.vector_store %arg11[%c0_42, %c0_43, %c0_44], %58 {strides = array<i32>} : memref<1x128x128xf32, #tpu.memory_space<vmem>>, vector<1x128x128xf32>,
    } else {
    }
    return
  }
  func.func @transform_0(%arg0: i32, %arg1: i32, %arg2: i32) -> (i32, i32, i32) {
    %c0_i32 = arith.constant 0 : i32
    %c0_i32_0 = arith.constant 0 : i32
    return %arg0, %arg1, %c0_i32 : i32, i32, i32
  }
  func.func @transform_1(%arg0: i32, %arg1: i32, %arg2: i32) -> (i32, i32, i32) {
    %c0_i32 = arith.constant 0 : i32
    %c0_i32_0 = arith.constant 0 : i32
    return %arg0, %arg2, %c0_i32 : i32, i32, i32
  }
  func.func @transform_2(%arg0: i32, %arg1: i32, %arg2: i32) -> (i32, i32) {
    %c0_i32 = arith.constant 0 : i32
    %c0_i32_0 = arith.constant 0 : i32
    %c0_i32_1 = arith.constant 0 : i32
    return %c0_i32, %c0_i32_0 : i32, i32
  }
  func.func @transform_3(%arg0: i32, %arg1: i32, %arg2: i32) -> (i32, i32) {
    %c0_i32 = arith.constant 0 : i32
    %c0_i32_0 = arith.constant 0 : i32
    %c0_i32_1 = arith.constant 0 : i32
    return %c0_i32, %c0_i32_0 : i32, i32
  }
  func.func @transform_4(%arg0: i32, %arg1: i32, %arg2: i32) -> (i32, i32) {
    %c0_i32 = arith.constant 0 : i32
    %c0_i32_0 = arith.constant 0 : i32
    %c0_i32_1 = arith.constant 0 : i32
    return %c0_i32, %c0_i32_0 : i32, i32
  }
  func.func @transform_5(%arg0: i32, %arg1: i32, %arg2: i32) -> (i32, i32) {
    %c0_i32 = arith.constant 0 : i32
    %c0_i32_0 = arith.constant 0 : i32
    %c0_i32_1 = arith.constant 0 : i32
    return %c0_i32, %c0_i32_0 : i32, i32
  }
  func.func @transform_6(%arg0: i32, %arg1: i32, %arg2: i32) -> (i32, i32) {
    %c0_i32 = arith.constant 0 : i32
    %c0_i32_0 = arith.constant 0 : i32
    %c0_i32_1 = arith.constant 0 : i32
    return %c0_i32, %c0_i32_0 : i32, i32
  }
  func.func @transform_7(%arg0: i32, %arg1: i32, %arg2: i32) -> (i32, i32) {
    %c0_i32 = arith.constant 0 : i32
    %c0_i32_0 = arith.constant 0 : i32
    %c0_i32_1 = arith.constant 0 : i32
    return %c0_i32, %c0_i32_0 : i32, i32
  }
  func.func @transform_8(%arg0: i32, %arg1: i32, %arg2: i32) -> (i32, i32, i32) {
    %c0_i32 = arith.constant 0 : i32
    %c0_i32_0 = arith.constant 0 : i32
    return %arg0, %arg1, %c0_i32 : i32, i32, i32
  }
}

</mosaic_0001>

<bundles_post_ra>
// kernel: tpu_custom_call.1
= control target key start
LH: loop header
LB: loop body
LE: loop exit
PB: predicated region body
PF: predicated region fallthrough
CT: control target
= control target key end

     0   :  { %13 = vsyncpa [#allocation7], 0  ;;  %s3804_s0 = inlined_call_operand.vmem [shape: f32[2,256,8], index: 0, kind: input, shape index: {}]   ;;  %s3805_s1 = inlined_call_operand.vmem [shape: f32[2,256,8], index: 1, kind: input, shape index: {}]   ;;  %s3806_s2 = inlined_call_operand.vmem [shape: f32[8,128], index: 2, kind: input, shape index: {}]   ;;  %s3807_s3 = inlined_call_operand.vmem [shape: f32[1,128], index: 3, kind: input, shape index: {}]   ;;  %s3808_s4 = inlined_call_operand.vmem [shape: f32[8,128], index: 4, kind: input, shape index: {}]   ;;  %s3809_s5 = inlined_call_operand.vmem [shape: f32[1,128], index: 5, kind: input, shape index: {}]   ;;  %s3810_s6 = inlined_call_operand.vmem [shape: f32[128,128], index: 6, kind: input, shape index: {}]   ;;  %s3811_s7 = inlined_call_operand.vmem [shape: f32[1,128], index: 7, kind: input, shape index: {}]   ;;  %s3812_s8 = inlined_call_operand.hbm [shape: f32[2,256,128], index: 8, kind: output, shape index: {}]  }
   0x1   :  { %15 = vsyncpa [#allocation7 + $0x1], 0  ;;  %s3006_s27 = smov 0   ;;  %s3008_s28 = smov 0  }
   0x2   :  { %s3010_s29 = smov 0   ;;  %s3012_s30 = smov 0  }
   0x3   :  { %s3014_s9 = smov 0   ;;  %s3016_s10 = smov 0  }
   0x4   :  { %s3018_s11 = smov 0   ;;  %s3020_s12 = smov 0  }
   0x5   :  { %s3022_s13 = smov 0   ;;  %s3024_s14 = smov 0  }
   0x6 LB: > { %3822 = sst [smem:[#allocation9_spill]] %s2916_s27  ;;  %s2214_s15 = sadd.s32 4294967295, %s2952_s14   ;;  %s2952_s14 = sphi %s3024_s14, %s21_s14   ;;  %s2948_s13 = sphi %s3022_s13, %s3844_s13   ;;  %s2944_s12 = sphi %s3020_s12, %s3843_s12   ;;  %s2940_s11 = sphi %s3018_s11, %s3842_s11   ;;  %s2936_s10 = sphi %s3016_s10, %s3841_s10   ;;  %s2932_s9 = sphi %s3014_s9, %s3840_s9   ;;  %s2928_s30 = sphi %s3012_s30, %s3839_s30   ;;  %s2924_s29 = sphi %s3010_s29, %s3838_s29   ;;  %s2920_s28 = sphi %s3008_s28, %s3846_s28   ;;  %s2916_s27 = sphi %s3006_s27, %s3845_s27  }
   0x7   : > { %3823 = sst [smem:[#allocation10_spill]] %s2924_s29  ;;  %s2215_s16 = sadd.s32 4294967294, %s2952_s14  }
   0x8   : > { %3824 = sst [smem:[#allocation11_spill]] %s2940_s11  ;;  %s33_s17 = sadd.s32 1, %s2940_s11 }
   0x9   : > { %3825 = sst [smem:[#allocation12_spill]] %s2944_s12  ;;  %p34_p0 = scmp.ge.s32.totalorder %s33_s17, 2 }
   0xa   : > { %3826 = sst [smem:[#allocation13_spill]] %s2948_s13  ;;  %s36_s18 = sadd.s32 1, %s2944_s12 }
   0xb   : > { %s40_s19 = sadd.s32 1, %s2948_s13  ;;  %p241_p1 = scmp.ne.s32.totalorder %s2924_s29, %s2920_s28 }
   0xc   : > { %s3848_s17 = smov (%p34_p0, %s33_s17), 0  ;;  %s3850_s18 = smov (!%p34_p0, %s36_s18), %s2944_s12 }
   0xd   : > { %3827 = sst [smem:[#allocation14_spill]] %s3848_s17  ;;  %p242_p2 = scmp.eq.s32.totalorder %s2214_s15, 7 }
   0xe   : > { %p247_p3 = scmp.ne.s32.totalorder %s2920_s28, %s2916_s27  ;;  %p38_p4 = scmp.ge.s32.totalorder %s3850_s18, 2 }
   0xf   : > { %p248_p5 = scmp.eq.s32.totalorder %s2215_s16, 7  ;;  %p3068_p6 = por %p242_p2, %p241_p1 }
  0x10   : > { %s3852_s18 = smov (%p38_p4, %s3850_s18), 0  ;;  %s3854_s19 = smov (!%p38_p4, %s40_s19), %s2948_s13 }
  0x11   : > { %3829 = sst [smem:[#allocation15_spill]] %s3852_s18  ;;  %p3075_p7 = por %p248_p5, %p247_p3 }
  0x12   : > { %p2218_p8 = scmp.ge.s32.totalorder %s2952_s14, 1  ;;  %p42_p9 = scmp.ge.s32.totalorder %s3854_s19, 2 }
  0x13   : > { %s3830_s21 = scalar_select %p3075_p7, 1, 0 }
  0x14   : > { %p310_p10 = scmp.lt.s32.totalorder %s2952_s14, 9  ;;  %s227_s22 = ssub.s32 %s2944_s12, %s3852_s18 }
  0x15   : > { %3831 = sst [smem:[#allocation16_spill]] %s3830_s21  ;;  %s3856_s19 = smov (%p42_p9, %s3854_s19), 0 }
  0x16   : > { %3832 = sst [smem:[#allocation17_spill]] %s3856_s19  ;;  %p311_p11 = pnand %p2218_p8, %p310_p10 }
  0x17   : > { %s226_s23 = ssub.s32 %s2948_s13, %s3856_s19  ;;  %s231_s25 = sadd.s32 1, %s2924_s29 }
  0x18   : > { %s228_s24 = sor.u32 %s227_s22, %s226_s23  ;;  %314 = sbr.rel (%p311_p11) target bundleno = 1698 (0x6a2), region = 52 }
  0x19   : > { %p229_p12 = scmp.eq.s32.totalorder %s228_s24, 0  ;;  %s3820_s15 = sand.u32 (!%p311_p11), 1, %s2920_s28  }
  0x1a   : > { %s3093_s16 = sshll.u32 (!%p311_p11), %s2932_s9, 4  ;;  %s2219_s18 = sshll.u32 (!%p311_p11), %s3820_s15, 7 }
  0x1b   : > { %s3089_s26 = scalar_select %p229_p12, %s2924_s29, %s231_s25  }
  0x1c   : > { %p358_p13 = scmp.lt.s32.totalorder (!%p311_p11), %s2936_s10, 1  ;;  %p360_p0 = scmp.lt.s32.totalorder (!%p311_p11), %s3093_s16, 31 }
  0x1d   : > { %3833 = sst [smem:[#allocation18_spill]] %s3089_s26  ;;  %s2223_s25 = sshll.u32 (!%p311_p11), %s2928_s30, 4 }
  0x1e   : > { %p370_p1 = scmp.lt.s32.totalorder (!%p311_p11), %s2223_s25, 31  ;;  %s3112_s27 = scalar_lea.vmem (!%p311_p11), [#allocation6], %s2219_s18 }
  0x1f   : > { %s359_s22 = scalar_select %p358_p13, %s2936_s10, 1 }
  0x20   : > { %s361_s23 = scalar_select %p360_p0, %s3093_s16, 31 }
  0x21   : > { %s2221_s24 = sshll.u32 %s359_s22, 5  ;;  %s3858_s25 = smov (!%p370_p1, %s2223_s25), 31 }
  0x22   : > { %s363_s19 = sadd.s32 %s2221_s24, %s361_s23  ;;  %s373_s9 = sadd.s32 %s2221_s24, %s3858_s25 }
  0x23   : > { %s2222_s17 = sshll.u32 %s363_s19, 3  ;;  %s2225_s26 = sshll.u32 %s373_s9, 3 }
  0x24   : > { %s3105_s11 = scalar_lea.vmem %s3804_s0, %s2222_s17  ;;  %s3110_s15 = scalar_lea.vmem %s3805_s1, %s2225_s26 }
  0x25   : > { %p2226_p2 = scmp.ne.s32.totalorder %s2928_s30, 0 }
  0x26   : > { %v399_v0 = vld [vmem:[%s3806_s2] sm:$0xff] (!%p2226_p2)  ;;  %vm407_vm0 = vcmask (!%p2226_p2), 64512   ;;  %v384_v3 = vld [vmem:[%s3105_s11 + $0x8] sm:$0xff] (!%p2226_p2)  ;;  %v385_v5 = vld [vmem:[%s3105_s11 + $0x10] sm:$0xff] (!%p2226_p2)  ;;  %vm617_vm1 = vcmask (!%p2226_p2), 7168   ;;  %v2954_v17 = vmov (!%p2226_p2), -inf  }
  0x27   : > { %382 = sbr.rel (%p2226_p2) target bundleno = 272 (0x110), region = 56  ;;  %v383_v1 = vld [vmem:[%s3105_s11] sm:$0xff] (!%p2226_p2)  ;;  %2401 = vmatprep.subr.mxu0 (!%p2226_p2), %v399_v0  ;;  %2631 = vmatprep.subr.mxu1 (!%p2226_p2), %v399_v0  ;;  %v392_v4 = vld [vmem:[%s3105_s11 + $0x48] sm:$0xff] (!%p2226_p2)  ;;  %v393_v6 = vld [vmem:[%s3105_s11 + $0x50] sm:$0xff] (!%p2226_p2)  ;;  %618 = vst.msk [vmem:[#allocation3] sm:$0xff] (!%p2226_p2), %vm617_vm1, %v2954_v17  ;;  %v2955_v18 = vmov (!%p2226_p2), 0.0  }
  0x28   : > { %v391_v2 = vld [vmem:[%s3105_s11 + $0x40] sm:$0xff] (!%p2226_p2)  ;;  %2402 = vmatpush3.msra.mxu0 (!%p2226_p2), %v399_v0  ;;  %2632 = vmatpush3.msra.mxu1 (!%p2226_p2), %v399_v0  ;;  %v386_v7 = vld [vmem:[%s3105_s11 + $0x18] sm:$0xff] (!%p2226_p2)  ;;  %v388_v11 = vld [vmem:[%s3105_s11 + $0x28] sm:$0xff] (!%p2226_p2)  ;;  %619 = vst.msk [vmem:[#allocation3 + $0x8] sm:$0xff] (!%p2226_p2), %vm617_vm1, %v2954_v17 }
  0x29   : > { %2403 = vmatprep.mubr.msk.f32.mxu0 (!%p2226_p2), %vm407_vm0, %v383_v1  ;;  %2415 = vmatprep.mubr.msk.f32.mxu1 (!%p2226_p2), %vm407_vm0, %v391_v2  ;;  %v394_v8 = vld [vmem:[%s3105_s11 + $0x58] sm:$0xff] (!%p2226_p2)  ;;  %v387_v9 = vld [vmem:[%s3105_s11 + $0x20] sm:$0xff] (!%p2226_p2)  ;;  %v396_v12 = vld [vmem:[%s3105_s11 + $0x68] sm:$0xff] (!%p2226_p2)  ;;  %620 = vst.msk [vmem:[#allocation3 + $0x10] sm:$0xff] (!%p2226_p2), %vm617_vm1, %v2954_v17 }
  0x2a   : > { %2404 = vmatmul.mubr.msk.f32.vlgmr.msra.gmra.mrb[0].mxu0 (!%p2226_p2), %vm407_vm0, %v384_v3  ;;  %2416 = vmatmul.mubr.msk.f32.vlgmr.msra.gmra.mrb[0].mxu1 (!%p2226_p2), %vm407_vm0, %v392_v4  ;;  %v395_v10 = vld [vmem:[%s3105_s11 + $0x60] sm:$0xff] (!%p2226_p2)  ;;  %v389_v13 = vld [vmem:[%s3105_s11 + $0x30] sm:$0xff] (!%p2226_p2)  ;;  %v390_v15 = vld [vmem:[%s3105_s11 + $0x38] sm:$0xff] (!%p2226_p2)  ;;  %621 = vst.msk [vmem:[#allocation3 + $0x18] sm:$0xff] (!%p2226_p2), %vm617_vm1, %v2954_v17 }
  0x2b   : > { %2406 = vmatprep.mubr.msk.f32.mxu0 (!%p2226_p2), %vm407_vm0, %v385_v5  ;;  %2418 = vmatprep.mubr.msk.f32.mxu1 (!%p2226_p2), %vm407_vm0, %v393_v6  ;;  %v397_v14 = vld [vmem:[%s3105_s11 + $0x70] sm:$0xff] (!%p2226_p2)  ;;  %v398_v16 = vld [vmem:[%s3105_s11 + $0x78] sm:$0xff] (!%p2226_p2)  ;;  %622 = vst.msk [vmem:[#allocation3 + $0x20] sm:$0xff] (!%p2226_p2), %vm617_vm1, %v2954_v17  ;;  %623 = vst.msk [vmem:[#allocation3 + $0x28] sm:$0xff] (!%p2226_p2), %vm617_vm1, %v2954_v17 }
  0x2c   : > { %624 = vst.msk [vmem:[#allocation3 + $0x30] sm:$0xff] (!%p2226_p2), %vm617_vm1, %v2954_v17  ;;  %625 = vst.msk [vmem:[#allocation3 + $0x38] sm:$0xff] (!%p2226_p2), %vm617_vm1, %v2954_v17  ;;  %v2227_v19 = vld [vmem:[%s3807_s3] ss:$0 sm:$0xff] (!%p2226_p2) }
  0x2d   : > { %626 = vst.msk [vmem:[#allocation3 + $0x40] sm:$0xff] (!%p2226_p2), %vm617_vm1, %v2954_v17  ;;  %627 = vst.msk [vmem:[#allocation3 + $0x48] sm:$0xff] (!%p2226_p2), %vm617_vm1, %v2954_v17 }
  0x2e   : > { %2407 = vmatmul.mubr.msk.f32.gmra.mrb[2].mxu0 %vm407_vm0, %v386_v7  ;;  %2419 = vmatmul.mubr.msk.f32.gmra.mrb[2].mxu1 %vm407_vm0, %v394_v8  ;;  %628 = vst.msk [vmem:[#allocation3 + $0x50] sm:$0xff] %vm617_vm1, %v2954_v17  ;;  %629 = vst.msk [vmem:[#allocation3 + $0x58] sm:$0xff] %vm617_vm1, %v2954_v17 }
  0x2f   : > { %2409 = vmatprep.mubr.msk.f32.mxu0 %vm407_vm0, %v387_v9  ;;  %2421 = vmatprep.mubr.msk.f32.mxu1 %vm407_vm0, %v395_v10  ;;  %630 = vst.msk [vmem:[#allocation3 + $0x60] sm:$0xff] %vm617_vm1, %v2954_v17  ;;  %631 = vst.msk [vmem:[#allocation3 + $0x68] sm:$0xff] %vm617_vm1, %v2954_v17 }
  0x30   : > { %632 = vst.msk [vmem:[#allocation3 + $0x70] sm:$0xff] %vm617_vm1, %v2954_v17  ;;  %633 = vst.msk [vmem:[#allocation3 + $0x78] sm:$0xff] %vm617_vm1, %v2954_v17 }
  0x31   : > { %634 = vst.msk [vmem:[#allocation4] sm:$0xff] %vm617_vm1, %v2955_v18  ;;  %635 = vst.msk [vmem:[#allocation4 + $0x8] sm:$0xff] %vm617_vm1, %v2955_v18 }
  0x32   : > { %2410 = vmatmul.mubr.msk.f32.gmra.mrb[4].mxu0 %vm407_vm0, %v388_v11  ;;  %2422 = vmatmul.mubr.msk.f32.gmra.mrb[4].mxu1 %vm407_vm0, %v396_v12  ;;  %636 = vst.msk [vmem:[#allocation4 + $0x10] sm:$0xff] %vm617_vm1, %v2955_v18  ;;  %637 = vst.msk [vmem:[#allocation4 + $0x18] sm:$0xff] %vm617_vm1, %v2955_v18 }
  0x33   : > { %2412 = vmatprep.mubr.msk.f32.mxu0 %vm407_vm0, %v389_v13  ;;  %2424 = vmatprep.mubr.msk.f32.mxu1 %vm407_vm0, %v397_v14  ;;  %638 = vst.msk [vmem:[#allocation4 + $0x20] sm:$0xff] %vm617_vm1, %v2955_v18  ;;  %639 = vst.msk [vmem:[#allocation4 + $0x28] sm:$0xff] %vm617_vm1, %v2955_v18 }
  0x34   : > { %640 = vst.msk [vmem:[#allocation4 + $0x30] sm:$0xff] %vm617_vm1, %v2955_v18  ;;  %641 = vst.msk [vmem:[#allocation4 + $0x38] sm:$0xff] %vm617_vm1, %v2955_v18 }
  0x35   : > { %642 = vst.msk [vmem:[#allocation4 + $0x40] sm:$0xff] %vm617_vm1, %v2955_v18  ;;  %643 = vst.msk [vmem:[#allocation4 + $0x48] sm:$0xff] %vm617_vm1, %v2955_v18 }
  0x36   : > { %2413 = vmatmul.mubr.msk.f32.gmra.mrb[6].mxu0 %vm407_vm0, %v390_v15  ;;  %2425 = vmatmul.mubr.msk.f32.gmra.mrb[6].mxu1 %vm407_vm0, %v398_v16  ;;  %644 = vst.msk [vmem:[#allocation4 + $0x50] sm:$0xff] %vm617_vm1, %v2955_v18  ;;  %645 = vst.msk [vmem:[#allocation4 + $0x58] sm:$0xff] %vm617_vm1, %v2955_v18 }
  0x37   : > { %646 = vst.msk [vmem:[#allocation4 + $0x60] sm:$0xff] %vm617_vm1, %v2955_v18  ;;  %647 = vst.msk [vmem:[#allocation4 + $0x68] sm:$0xff] %vm617_vm1, %v2955_v18 }
  0x38   : > { %648 = vst.msk [vmem:[#allocation4 + $0x70] sm:$0xff] %vm617_vm1, %v2955_v18  ;;  %649 = vst.msk [vmem:[#allocation4 + $0x78] sm:$0xff] %vm617_vm1, %v2955_v18 }
  0x39   : > { %650 = vst [vmem:[#allocation5] sm:$0xff] %v2955_v18  ;;  %651 = vst [vmem:[#allocation5 + $0x8] sm:$0xff] %v2955_v18 }
  0x3a   : > { %652 = vst [vmem:[#allocation5 + $0x10] sm:$0xff] %v2955_v18  ;;  %653 = vst [vmem:[#allocation5 + $0x18] sm:$0xff] %v2955_v18 }
  0x3b   : > { %654 = vst [vmem:[#allocation5 + $0x20] sm:$0xff] %v2955_v18  ;;  %655 = vst [vmem:[#allocation5 + $0x28] sm:$0xff] %v2955_v18 }
  0x3c   : > { %656 = vst [vmem:[#allocation5 + $0x30] sm:$0xff] %v2955_v18  ;;  %657 = vst [vmem:[#allocation5 + $0x38] sm:$0xff] %v2955_v18 }
  0x3d   : > { %658 = vst [vmem:[#allocation5 + $0x40] sm:$0xff] %v2955_v18  ;;  %659 = vst [vmem:[#allocation5 + $0x48] sm:$0xff] %v2955_v18 }
  0x3e   : > { %660 = vst [vmem:[#allocation5 + $0x50] sm:$0xff] %v2955_v18  ;;  %661 = vst [vmem:[#allocation5 + $0x58] sm:$0xff] %v2955_v18 }
  0x3f   : > { %662 = vst [vmem:[#allocation5 + $0x60] sm:$0xff] %v2955_v18  ;;  %663 = vst [vmem:[#allocation5 + $0x68] sm:$0xff] %v2955_v18 }
  0x40   : > { %664 = vst [vmem:[#allocation5 + $0x70] sm:$0xff] %v2955_v18  ;;  %665 = vst [vmem:[#allocation5 + $0x78] sm:$0xff] %v2955_v18 }
  0xfd   : > { %v2405_v20 = vpop.f32.mrb[0].mxu0  ;;  %v2417_v21 = vpop.f32.mrb[0].mxu1 }
  0xfe   : > { %v528_v22 = vadd.f32 %v2405_v20, %v2227_v19  ;;  %v568_v23 = vadd.f32 %v2417_v21, %v2227_v19  ;;  %v522_v24 = vpop.f32.mrb[1].mxu0  ;;  %v562_v25 = vpop.f32.mrb[1].mxu1 }
  0xff   : > { %v523_v26 = vadd.f32 %v2227_v19, %v522_v24  ;;  %v563_v27 = vadd.f32 %v2227_v19, %v562_v25 }
 0x101   : > { %v601_v28 = vpack.c.bf16 %v528_v22, %v523_v26  ;;  %v605_v29 = vpack.c.bf16 %v568_v23, %v563_v27  ;;  %v2408_v30 = vpop.f32.mrb[2].mxu0  ;;  %v2420_v31 = vpop.f32.mrb[2].mxu1 }
 0x102   : > { %v538_v32 = vadd.f32 %v2408_v30, %v2227_v19  ;;  %v578_v33 = vadd.f32 %v2420_v31, %v2227_v19  ;;  %v532_v34 = vpop.f32.mrb[3].mxu0  ;;  %v572_v35 = vpop.f32.mrb[3].mxu1 }
 0x103   : > { %609 = vst [vmem:[#allocation2] sm:$0xff] %v601_v28  ;;  %613 = vst [vmem:[#allocation2 + $0x20] sm:$0xff] %v605_v29  ;;  %v533_v36 = vadd.f32 %v2227_v19, %v532_v34  ;;  %v573_v37 = vadd.f32 %v2227_v19, %v572_v35 }
 0x105   : > { %v602_v38 = vpack.c.bf16 %v538_v32, %v533_v36  ;;  %v606_v39 = vpack.c.bf16 %v578_v33, %v573_v37  ;;  %v2411_v40 = vpop.f32.mrb[4].mxu0  ;;  %v2423_v41 = vpop.f32.mrb[4].mxu1 }
 0x106   : > { %v548_v42 = vadd.f32 %v2411_v40, %v2227_v19  ;;  %v588_v43 = vadd.f32 %v2423_v41, %v2227_v19  ;;  %v542_v44 = vpop.f32.mrb[5].mxu0  ;;  %v582_v45 = vpop.f32.mrb[5].mxu1 }
 0x107   : > { %610 = vst [vmem:[#allocation2 + $0x8] sm:$0xff] %v602_v38  ;;  %614 = vst [vmem:[#allocation2 + $0x28] sm:$0xff] %v606_v39  ;;  %v543_v46 = vadd.f32 %v2227_v19, %v542_v44  ;;  %v583_v47 = vadd.f32 %v2227_v19, %v582_v45 }
 0x109   : > { %v603_v48 = vpack.c.bf16 %v548_v42, %v543_v46  ;;  %v607_v49 = vpack.c.bf16 %v588_v43, %v583_v47  ;;  %v2414_v50 = vpop.f32.mrb[6].mxu0  ;;  %v2426_v51 = vpop.f32.mrb[6].mxu1 }
 0x10a   : > { %v558_v52 = vadd.f32 %v2414_v50, %v2227_v19  ;;  %v598_v53 = vadd.f32 %v2426_v51, %v2227_v19  ;;  %v552_v54 = vpop.f32.mrb[7].mxu0  ;;  %v592_v55 = vpop.f32.mrb[7].mxu1 }
 0x10b   : > { %611 = vst [vmem:[#allocation2 + $0x10] sm:$0xff] %v603_v48  ;;  %615 = vst [vmem:[#allocation2 + $0x30] sm:$0xff] %v607_v49  ;;  %v553_v56 = vadd.f32 %v2227_v19, %v552_v54  ;;  %v593_v57 = vadd.f32 %v2227_v19, %v592_v55 }
 0x10d   : > { %v604_v58 = vpack.c.bf16 %v558_v52, %v553_v56  ;;  %v608_v59 = vpack.c.bf16 %v598_v53, %v593_v57 }
 0x10f   : > { %612 = vst [vmem:[#allocation2 + $0x18] sm:$0xff] %v604_v58  ;;  %616 = vst [vmem:[#allocation2 + $0x38] sm:$0xff] %v608_v59 }
 0x110 PF: > { %v682_v60 = vld [vmem:[%s3806_s2] sm:$0xff]  ;;  %vm690_vm2 = vcmask 64512   ;;  %v3190_v62 = vld [vmem:[%s3110_s15 + $0x8] sm:$0xff]  ;;  %v3194_v63 = vld [vmem:[%s3110_s15 + $0x10] sm:$0xff]  ;;  %vm1470_vm3 = vcmask 7168   ;;  %p2278_p3 = scmp.ne.s32.totalorder %s2928_s30, 1 }
 0x111   : > { %v666_v61 = vld [vmem:[%s3110_s15] sm:$0xff]  ;;  %2427 = vmatprep.subr.mxu0 %v682_v60  ;;  %v3202_v0 = vld [vmem:[%s3110_s15 + $0x18] sm:$0xff]  ;;  %v3212_v2 = vld [vmem:[%s3110_s15 + $0x28] sm:$0xff] }
 0x112   : > { %2429 = vmatprep.mubr.msk.f32.mxu0 %vm690_vm2, %v666_v61  ;;  %2428 = vmatpush3.msra.mxu0 %v682_v60  ;;  %v3205_v1 = vld [vmem:[%s3110_s15 + $0x20] sm:$0xff]  ;;  %v3215_v3 = vld [vmem:[%s3110_s15 + $0x30] sm:$0xff]  ;;  %v3222_v4 = vld [vmem:[%s3110_s15 + $0x38] sm:$0xff] }
 0x113   : > { %2455 = vmatprep.mubr.msk.f32.mxu1 %vm690_vm2, %v666_v61  ;;  %2430 = vmatmul.mubr.msk.f32.vlgmr.msra.gmra.mrb[0].mxu0 %vm690_vm2, %v3190_v62  ;;  %v3225_v5 = vld [vmem:[%s3110_s15 + $0x40] sm:$0xff]  ;;  %v3232_v6 = vld [vmem:[%s3110_s15 + $0x48] sm:$0xff]  ;;  %v3235_v7 = vld [vmem:[%s3110_s15 + $0x50] sm:$0xff] }
 0x114   : > { %2432 = vmatprep.mubr.msk.f32.mxu0 %vm690_vm2, %v3194_v63  ;;  %v3242_v8 = vld [vmem:[%s3110_s15 + $0x58] sm:$0xff]  ;;  %v3245_v9 = vld [vmem:[%s3110_s15 + $0x60] sm:$0xff]  ;;  %v3252_v10 = vld [vmem:[%s3110_s15 + $0x68] sm:$0xff] }
 0x115   : > { %v3255_v11 = vld [vmem:[%s3110_s15 + $0x70] sm:$0xff]  ;;  %v3262_v12 = vld [vmem:[%s3110_s15 + $0x78] sm:$0xff]  ;;  %v1037_v13 = vld [vmem:[#allocation2] sm:$0xff] }
 0x116   : > { %v2244_v14 = vld [vmem:[%s3807_s3] ss:$0 sm:$0xff]  ;;  %v1038_v55 = vld [vmem:[#allocation2 + $0x8] sm:$0xff]  ;;  %v1039_v56 = vld [vmem:[#allocation2 + $0x10] sm:$0xff] }
 0x117   : > { %2433 = vmatmul.mubr.msk.f32.gmra.mrb[2].mxu0 %vm690_vm2, %v3202_v0  ;;  %v1040_v57 = vld [vmem:[#allocation2 + $0x18] sm:$0xff]  ;;  %v1041_v58 = vld [vmem:[#allocation2 + $0x20] sm:$0xff]  ;;  %v1042_v59 = vld [vmem:[#allocation2 + $0x28] sm:$0xff] }
 0x118   : > { %2435 = vmatprep.mubr.msk.f32.mxu0 %vm690_vm2, %v3205_v1  ;;  %v1043_v60 = vld [vmem:[#allocation2 + $0x30] sm:$0xff]  ;;  %v1044_v61 = vld [vmem:[#allocation2 + $0x38] sm:$0xff] }
 0x11b   : > { %2436 = vmatmul.mubr.msk.f32.gmra.mrb[4].mxu0 %vm690_vm2, %v3212_v2 }
 0x11c   : > { %2438 = vmatprep.mubr.msk.f32.mxu0 %vm690_vm2, %v3215_v3 }
 0x11f   : > { %2439 = vmatmul.mubr.msk.f32.gmra.mrb[6].mxu0 %vm690_vm2, %v3222_v4 }
 0x120   : > { %2441 = vmatprep.mubr.msk.f32.mxu0 %vm690_vm2, %v3225_v5 }
 0x123   : > { %2442 = vmatmul.mubr.msk.f32.gmra.mrb[8].mxu0 %vm690_vm2, %v3232_v6 }
 0x124   : > { %2444 = vmatprep.mubr.msk.f32.mxu0 %vm690_vm2, %v3235_v7 }
 0x127   : > { %2445 = vmatmul.mubr.msk.f32.gmra.mrb[10].mxu0 %vm690_vm2, %v3242_v8 }
 0x128   : > { %2447 = vmatprep.mubr.msk.f32.mxu0 %vm690_vm2, %v3245_v9 }
 0x12b   : > { %2448 = vmatmul.mubr.msk.f32.gmra.mrb[12].mxu0 %vm690_vm2, %v3252_v10 }
 0x12c   : > { %2450 = vmatprep.mubr.msk.f32.mxu0 %vm690_vm2, %v3255_v11 }
 0x12f   : > { %2451 = vmatmul.mubr.msk.f32.gmra.mrb[14].mxu0 %vm690_vm2, %v3262_v12 }
 0x130   : > { %2495 = vmatprep.mubr.bf16.mxu0 %v1037_v13  ;;  %v884_v13 = vld [vmem:[%s3808_s4] sm:$0xff] }
 0x131   : > { %2453 = vmatprep.subr.mxu1 %v884_v13 }
 0x132   : > { %2454 = vmatpush3.msra.mxu1 %v884_v13  ;;  %v3411_v13 = vld [vmem:[#allocation3 + $0x28] sm:$0xff] }
 0x133   : > { %2456 = vmatmul.mubr.msk.f32.vlgmr.msra.gmra.mrb[0].mxu1 %vm690_vm2, %v3190_v62 }
 0x134   : > { %2458 = vmatprep.mubr.msk.f32.mxu1 %vm690_vm2, %v3194_v63 }
 0x137   : > { %2459 = vmatmul.mubr.msk.f32.gmra.mrb[2].mxu1 %vm690_vm2, %v3202_v0 }
 0x138   : > { %2461 = vmatprep.mubr.msk.f32.mxu1 %vm690_vm2, %v3205_v1 }
 0x13b   : > { %2462 = vmatmul.mubr.msk.f32.gmra.mrb[4].mxu1 %vm690_vm2, %v3212_v2 }
 0x13c   : > { %2464 = vmatprep.mubr.msk.f32.mxu1 %vm690_vm2, %v3215_v3 }
 0x13f   : > { %2465 = vmatmul.mubr.msk.f32.gmra.mrb[6].mxu1 %vm690_vm2, %v3222_v4 }
 0x140   : > { %2467 = vmatprep.mubr.msk.f32.mxu1 %vm690_vm2, %v3225_v5 }
 0x143   : > { %2468 = vmatmul.mubr.msk.f32.gmra.mrb[8].mxu1 %vm690_vm2, %v3232_v6 }
 0x144   : > { %2470 = vmatprep.mubr.msk.f32.mxu1 %vm690_vm2, %v3235_v7  ;;  %v2956_v7 = vmov 0  }
 0x145   : > { %2743 = vset.pattern.permute.xlu1 %v2956_v7  ;;  %2742 = vset.pattern.permute.xlu0 %v2956_v7 }
 0x147   : > { %2471 = vmatmul.mubr.msk.f32.gmra.mrb[10].mxu1 %vm690_vm2, %v3242_v8 }
 0x148   : > { %2473 = vmatprep.mubr.msk.f32.mxu1 %vm690_vm2, %v3245_v9 }
 0x14b   : > { %2474 = vmatmul.mubr.msk.f32.gmra.mrb[12].mxu1 %vm690_vm2, %v3252_v10 }
 0x14c   : > { %2476 = vmatprep.mubr.msk.f32.mxu1 %vm690_vm2, %v3255_v11 }
 0x14f   : > { %2477 = vmatmul.mubr.msk.f32.gmra.mrb[14].mxu1 %vm690_vm2, %v3262_v12 }
 0x1e6   : > { %v2431_v15 = vpop.f32.mrb[0].mxu0 }
 0x1e7   : > { %v811_v16 = vadd.f32 %v2431_v15, %v2244_v14  ;;  %v805_v17 = vpop.f32.mrb[1].mxu0 }
 0x1e8   : > { %v806_v18 = vadd.f32 %v2244_v14, %v805_v17 }
 0x1ea   : > { %v1045_v19 = vpack.c.bf16 %v811_v16, %v806_v18  ;;  %v2434_v20 = vpop.f32.mrb[2].mxu0  ;;  %v3353_v16 = vld [vmem:[%s3809_s5] ss:$0 sm:$0xff] }
 0x1eb   : > { %v821_v21 = vadd.f32 %v2434_v20, %v2244_v14  ;;  %v815_v22 = vpop.f32.mrb[3].mxu0 }
 0x1ec   : > { %2479 = vmatprep.subr.bf16.mxu0 %v1045_v19  ;;  %v816_v23 = vadd.f32 %v2244_v14, %v815_v22 }
 0x1ed   : > { %2480 = vmatpush3.bf16.xpose.msra.mxu0 %v1045_v19 }
 0x1ee   : > { %v1046_v24 = vpack.c.bf16 %v821_v21, %v816_v23  ;;  %v2437_v25 = vpop.f32.mrb[4].mxu0 }
 0x1ef   : > { %v831_v26 = vadd.f32 %v2437_v25, %v2244_v14  ;;  %v825_v27 = vpop.f32.mrb[5].mxu0 }
 0x1f0   : > { %2481 = vmatprep.subr.bf16.mxu0 %v1046_v24  ;;  %v826_v28 = vadd.f32 %v2244_v14, %v825_v27 }
 0x1f2   : > { %v1047_v29 = vpack.c.bf16 %v831_v26, %v826_v28  ;;  %v2440_v30 = vpop.f32.mrb[6].mxu0 }
 0x1f3   : > { %v841_v31 = vadd.f32 %v2440_v30, %v2244_v14  ;;  %v835_v32 = vpop.f32.mrb[7].mxu0 }
 0x1f4   : > { %v836_v33 = vadd.f32 %v2244_v14, %v835_v32  ;;  %v3361_v32 = vld [vmem:[#allocation3 + $0x10] sm:$0xff] }
 0x1f5   : > { %2482 = vmatpush3.bf16.xpose.msra.mxu0 %v1046_v24 }
 0x1f6   : > { %2483 = vmatprep.subr.bf16.mxu0 %v1047_v29  ;;  %v1048_v34 = vpack.c.bf16 %v841_v31, %v836_v33  ;;  %v2443_v35 = vpop.f32.mrb[8].mxu0  ;;  %v3363_v33 = vld [vmem:[#allocation3] sm:$0xff] }
 0x1f7   : > { %v851_v36 = vadd.f32 %v2443_v35, %v2244_v14  ;;  %v845_v37 = vpop.f32.mrb[9].mxu0 }
 0x1f8   : > { %v846_v38 = vadd.f32 %v2244_v14, %v845_v37 }
 0x1fa   : > { %v1049_v39 = vpack.c.bf16 %v851_v36, %v846_v38  ;;  %v2446_v40 = vpop.f32.mrb[10].mxu0  ;;  %v3371_v38 = vld [vmem:[#allocation3 + $0x18] sm:$0xff] }
 0x1fb   : > { %v861_v41 = vadd.f32 %v2446_v40, %v2244_v14  ;;  %v855_v42 = vpop.f32.mrb[11].mxu0 }
 0x1fc   : > { %v856_v43 = vadd.f32 %v2244_v14, %v855_v42 }
 0x1fd   : > { %2484 = vmatpush3.bf16.xpose.msra.mxu0 %v1047_v29 }
 0x1fe   : > { %2485 = vmatprep.subr.bf16.mxu0 %v1048_v34  ;;  %v1050_v44 = vpack.c.bf16 %v861_v41, %v856_v43  ;;  %v2449_v45 = vpop.f32.mrb[12].mxu0 }
 0x1ff   : > { %v871_v46 = vadd.f32 %v2449_v45, %v2244_v14  ;;  %v865_v47 = vpop.f32.mrb[13].mxu0 }
 0x200   : > { %v866_v48 = vadd.f32 %v2244_v14, %v865_v47 }
 0x202   : > { %v1051_v49 = vpack.c.bf16 %v871_v46, %v866_v48  ;;  %v2452_v50 = vpop.f32.mrb[14].mxu0  ;;  %v3392_v48 = vld [vmem:[#allocation3 + $0x20] sm:$0xff] }
 0x203   : > { %v881_v51 = vadd.f32 %v2452_v50, %v2244_v14  ;;  %v875_v52 = vpop.f32.mrb[15].mxu0 }
 0x204   : > { %v876_v53 = vadd.f32 %v2244_v14, %v875_v52 }
 0x205   : > { %2486 = vmatpush3.bf16.xpose.msra.mxu0 %v1048_v34 }
 0x206   : > { %2487 = vmatprep.subr.bf16.mxu0 %v1049_v39  ;;  %v1052_v54 = vpack.c.bf16 %v881_v51, %v876_v53  ;;  %v2457_v17 = vpop.f32.mrb[0].mxu1  ;;  %v3396_v51 = vld [vmem:[#allocation3 + $0x38] sm:$0xff] }
 0x207   : > { %v964_v18 = vadd.f32 %v2457_v17, %v3353_v16  ;;  %v958_v19 = vpop.f32.mrb[1].mxu1 }
 0x208   : > { %v959_v20 = vadd.f32 %v3353_v16, %v958_v19 }
 0x20a   : > { %v1607_v21 = vpack.c.bf16 %v964_v18, %v959_v20  ;;  %v2460_v22 = vpop.f32.mrb[2].mxu1 }
 0x20b   : > { %v974_v23 = vadd.f32 %v2460_v22, %v3353_v16  ;;  %v968_v24 = vpop.f32.mrb[3].mxu1 }
 0x20c   : > { %v969_v25 = vadd.f32 %v3353_v16, %v968_v24  ;;  %2511 = vmatprep.subr.bf16.mxu1 %v1607_v21 }
 0x20d   : > { %2488 = vmatpush3.bf16.xpose.msra.mxu0 %v1049_v39  ;;  %2512 = vmatpush3.bf16.msra.mxu1 %v1607_v21  ;;  %v3376_v39 = vld [vmem:[#allocation3 + $0x8] sm:$0xff] }
 0x20e   : > { %2489 = vmatprep.subr.bf16.mxu0 %v1050_v44  ;;  %v1608_v26 = vpack.c.bf16 %v974_v23, %v969_v25  ;;  %v2463_v27 = vpop.f32.mrb[4].mxu1  ;;  %v3423_v23 = vld [vmem:[#allocation3 + $0x40] sm:$0xff] }
 0x20f   : > { %v984_v28 = vadd.f32 %v2463_v27, %v3353_v16  ;;  %v978_v29 = vpop.f32.mrb[5].mxu1 }
 0x210   : > { %v979_v30 = vadd.f32 %v3353_v16, %v978_v29  ;;  %2513 = vmatprep.subr.bf16.mxu1 %v1608_v26 }
 0x211   : > { %2514 = vmatpush3.bf16.msra.mxu1 %v1608_v26  ;;  %v3428_v26 = vld [vmem:[#allocation3 + $0x58] sm:$0xff] }
 0x212   : > { %v1609_v31 = vpack.c.bf16 %v984_v28, %v979_v30  ;;  %v2466_v40 = vpop.f32.mrb[6].mxu1 }
 0x213   : > { %v988_v42 = vpop.f32.mrb[7].mxu1  ;;  %v994_v45 = vadd.f32 %v2466_v40, %v3353_v16  ;;  %v3440_v40 = vld [vmem:[#allocation3 + $0x50] sm:$0xff] }
 0x214   : > { %2515 = vmatprep.subr.bf16.mxu1 %v1609_v31  ;;  %v989_v46 = vadd.f32 %v3353_v16, %v988_v42 }
 0x215   : > { %2490 = vmatpush3.bf16.xpose.msra.mxu0 %v1050_v44  ;;  %2516 = vmatpush3.bf16.msra.mxu1 %v1609_v31 }
 0x216   : > { %2491 = vmatprep.subr.bf16.mxu0 %v1051_v49  ;;  %v2469_v50 = vpop.f32.mrb[8].mxu1 }
 0x217   : > { %v998_v52 = vpop.f32.mrb[9].mxu1 }
 0x21d   : > { %2492 = vmatpush3.bf16.xpose.msra.mxu0 %v1051_v49  ;;  %v1610_v49 = vpack.c.bf16 %v994_v45, %v989_v46 }
 0x21e   : > { %2493 = vmatprep.subr.bf16.mxu0 %v1052_v54 }
 0x21f   : > { %2517 = vmatprep.subr.bf16.mxu1 %v1610_v49 }
 0x220   : > { %2518 = vmatpush3.bf16.msra.mxu1 %v1610_v49 }
 0x225   : > { %2494 = vmatpush3.bf16.xpose.msra.mxu0 %v1052_v54  ;;  %v1004_v54 = vadd.f32 %v2469_v50, %v3353_v16 }
 0x22c   : > { %2496 = vmatmul.mubr.bf16.vlgmr.msra.gmra.mrb[16].mxu0 %v1038_v55  ;;  %v999_v55 = vadd.f32 %v3353_v16, %v998_v52 }
 0x22d   : > { %2499 = vmatprep.mubr.bf16.mxu0 %v1039_v56 }
 0x234   : > { %2500 = vmatmul.mubr.bf16.gmra.mrb[20].mxu0 %v1040_v57 }
 0x235   : > { %2503 = vmatprep.mubr.bf16.mxu0 %v1041_v58 }
 0x23c   : > { %2504 = vmatmul.mubr.bf16.gmra.mrb[24].mxu0 %v1042_v59  ;;  %v3407_v59 = vld [vmem:[#allocation3 + $0x30] sm:$0xff] }
 0x23d   : > { %2507 = vmatprep.mubr.bf16.mxu0 %v1043_v60  ;;  %v1611_v60 = vpack.c.bf16 %v1004_v54, %v999_v55 }
 0x23f   : > { %2519 = vmatprep.subr.bf16.mxu1 %v1611_v60 }
 0x240   : > { %2520 = vmatpush3.bf16.msra.mxu1 %v1611_v60 }
 0x244   : > { %2508 = vmatmul.mubr.bf16.gmra.mrb[28].mxu0 %v1044_v61  ;;  %v2472_v61 = vpop.f32.mrb[10].mxu1 }
 0x245   : > { %v1008_v7 = vpop.f32.mrb[11].mxu1  ;;  %v1014_v18 = vadd.f32 %v2472_v61, %v3353_v16 }
 0x246   : > { %v1009_v19 = vadd.f32 %v3353_v16, %v1008_v7  ;;  %v2475_v25 = vpop.f32.mrb[12].mxu1 }
 0x247   : > { %v1024_v27 = vadd.f32 %v2475_v25, %v3353_v16  ;;  %v1018_v28 = vpop.f32.mrb[13].mxu1 }
 0x248   : > { %v1612_v24 = vpack.c.bf16 %v1014_v18, %v1009_v19  ;;  %v1019_v30 = vadd.f32 %v3353_v16, %v1018_v28  ;;  %v2478_v42 = vpop.f32.mrb[14].mxu1  ;;  %v3477_v19 = vld [vmem:[#allocation3 + $0x70] sm:$0xff] }
 0x249   : > { %v1034_v45 = vadd.f32 %v2478_v42, %v3353_v16  ;;  %v1028_v46 = vpop.f32.mrb[15].mxu1 }
 0x24a   : > { %2521 = vmatprep.subr.bf16.mxu1 %v1612_v24  ;;  %v1029_v50 = vadd.f32 %v3353_v16, %v1028_v46  ;;  %v3464_v16 = vld [vmem:[#allocation3 + $0x78] sm:$0xff] }
 0x24b   : > { %2522 = vmatpush3.bf16.msra.mxu1 %v1612_v24 }
 0x24c   : > { %v1614_v60 = vpack.c.bf16 %v1034_v45, %v1029_v50 }
 0x2ff   : > { %v3302_v62 = vpop.f32.mrb[16].mxu0 }
 0x300   : > { %1170 = vmax.xlane.f32.xlu1 %v3302_v62  ;;  %v3305_v63 = vpop.f32.mrb[17].mxu0 }
 0x301   : > { %1166 = vmax.xlane.f32.xlu0 %v3305_v63  ;;  %v3308_v0 = vpop.f32.mrb[18].mxu0 }
 0x302   : > { %v3310_v1 = vpop.f32.mrb[19].mxu0 }
 0x304   : > { %1172 = vmax.xlane.f32.xlu1 %v3308_v0 }
 0x305   : > { %1168 = vmax.xlane.f32.xlu0 %v3310_v1 }
 0x307   : > { %v3314_v2 = vpop.f32.mrb[20].mxu0 }
 0x308   : > { %v3316_v3 = vpop.f32.mrb[21].mxu0 }
 0x309   : > { %1174 = vmax.xlane.f32.xlu0 %v3316_v3  ;;  %v3319_v4 = vpop.f32.mrb[22].mxu0 }
 0x30a   : > { %1180 = vmax.xlane.f32.xlu1 %v3319_v4  ;;  %v3322_v5 = vpop.f32.mrb[23].mxu0 }
 0x30d   : > { %1178 = vmax.xlane.f32.xlu0 %v3314_v2 }
 0x30e   : > { %1176 = vmax.xlane.f32.xlu1 %v3322_v5 }
 0x30f   : > { %v3326_v6 = vpop.f32.mrb[24].mxu0 }
 0x310   : > { %v3328_v8 = vpop.f32.mrb[25].mxu0 }
 0x311   : > { %v3330_v9 = vpop.f32.mrb[26].mxu0  ;;  %1182 = vmax.xlane.f32.xlu0 %v3328_v8 }
 0x312   : > { %1188 = vmax.xlane.f32.xlu1 %v3330_v9  ;;  %v3334_v10 = vpop.f32.mrb[27].mxu0 }
 0x315   : > { %1186 = vmax.xlane.f32.xlu0 %v3326_v6 }
 0x316   : > { %1184 = vmax.xlane.f32.xlu1 %v3334_v10 }
 0x317   : > { %v3338_v11 = vpop.f32.mrb[28].mxu0 }
 0x318   : > { %v3340_v12 = vpop.f32.mrb[29].mxu0 }
 0x319   : > { %v3342_v14 = vpop.f32.mrb[30].mxu0  ;;  %1190 = vmax.xlane.f32.xlu0 %v3340_v12 }
 0x31a   : > { %1196 = vmax.xlane.f32.xlu1 %v3342_v14  ;;  %v3346_v15 = vpop.f32.mrb[31].mxu0 }
 0x31d   : > { %1194 = vmax.xlane.f32.xlu0 %v3338_v11 }
 0x31e   : > { %1192 = vmax.xlane.f32.xlu1 %v3346_v15 }
 0x38d   : > { %v1171_v34 = vpop.xlane.xlu1 %1170 }
 0x38e   : > { %v3366_v35 = vmax.f32 %v3361_v32, %v1171_v34  ;;  %v1167_v36 = vpop.xlane.xlu0 %1166 }
 0x38f   : > { %v3369_v37 = vmax.f32 %v3363_v33, %v1167_v36 }
 0x390   : > { %1746 = vst.msk [vmem:[#allocation3 + $0x10] sm:$0xff] %vm1470_vm3, %v3366_v35  ;;  %1274 = vperm.xlu1 %2743, %v3366_v35  }
 0x391   : > { %1744 = vst.msk [vmem:[#allocation3] sm:$0xff] %vm1470_vm3, %v3369_v37  ;;  %v1173_v41 = vpop.xlane.xlu1 %1172  ;;  %1264 = vperm.xlu0 %2742, %v3369_v37   ;;  %v1214_v52 = vsub.f32 %v3363_v33, %v3369_v37 }
 0x392   : > { %v3382_v43 = vmax.f32 %v3371_v38, %v1173_v41  ;;  %v1169_v44 = vpop.xlane.xlu0 %1168  ;;  %v1613_v41 = vpack.c.bf16 %v1024_v27, %v1019_v30 }
 0x393   : > { %v3387_v47 = vmax.f32 %v3376_v39, %v1169_v44  ;;  %v3445_v44 = vld [vmem:[#allocation3 + $0x48] sm:$0xff]  ;;  %v1230_v37 = vmul.f32 1.442695, %v1214_v52 }
 0x394   : > { %1747 = vst.msk [vmem:[#allocation3 + $0x18] sm:$0xff] %vm1470_vm3, %v3382_v43  ;;  %1279 = vperm.xlu1 %2743, %v3382_v43   ;;  %2523 = vmatprep.subr.bf16.mxu1 %v1613_v41  ;;  %v1217_v61 = vsub.f32 %v3371_v38, %v3382_v43 }
 0x395   : > { %1745 = vst.msk [vmem:[#allocation3 + $0x8] sm:$0xff] %vm1470_vm3, %v3387_v47  ;;  %2524 = vmatpush3.bf16.msra.mxu1 %v1613_v41  ;;  %v1215_v24 = vsub.f32 %v3376_v39, %v3387_v47  ;;  %2744 = vpow2.f32 %v1230_v37 }
 0x396   : > { %v1175_v53 = vpop.xlane.xlu0 %1174  ;;  %2525 = vmatprep.subr.bf16.mxu1 %v1614_v60  ;;  %v1236_v25 = vmul.f32 1.442695, %v1217_v61 }
 0x397   : > { %v3401_v56 = vmax.f32 %v3392_v48, %v1175_v53  ;;  %v1181_v57 = vpop.xlane.xlu1 %1180 }
 0x398   : > { %v3404_v58 = vmax.f32 %v3396_v51, %v1181_v57  ;;  %1269 = vperm.xlu1 %2743, %v3387_v47   ;;  %v3459_v57 = vld [vmem:[#allocation3 + $0x60] sm:$0xff]  ;;  %v1216_v47 = vsub.f32 %v3361_v32, %v3366_v35  ;;  %2746 = vpow2.f32 %v1236_v25 }
 0x399   : > { %1748 = vst.msk [vmem:[#allocation3 + $0x20] sm:$0xff] %vm1470_vm3, %v3401_v56  ;;  %2526 = vmatpush3.bf16.msra.mxu1 %v1614_v60  ;;  %v1218_v42 = vsub.f32 %v3392_v48, %v3401_v56 }
 0x39a   : > { %1751 = vst.msk [vmem:[#allocation3 + $0x38] sm:$0xff] %vm1470_vm3, %v3404_v58  ;;  %v1179_v17 = vpop.xlane.xlu0 %1178  ;;  %v1234_v41 = vmul.f32 1.442695, %v1216_v47 }
 0x39b   : > { %v3418_v20 = vmax.f32 %v3407_v59, %v1179_v17  ;;  %v1177_v21 = vpop.xlane.xlu1 %1176 }
 0x39c   : > { %v3421_v22 = vmax.f32 %v3411_v13, %v1177_v21  ;;  %v1163_v21 = vld [vmem:[#allocation3 + $0x68] sm:$0xff] }
 0x39d   : > { %1750 = vst.msk [vmem:[#allocation3 + $0x30] sm:$0xff] %vm1470_vm3, %v3418_v20  ;;  %1294 = vperm.xlu1 %2743, %v3418_v20  }
 0x39e   : > { %1749 = vst.msk [vmem:[#allocation3 + $0x28] sm:$0xff] %vm1470_vm3, %v3421_v22  ;;  %v1183_v29 = vpop.xlane.xlu0 %1182  ;;  %v1219_v27 = vsub.f32 %v3411_v13, %v3421_v22  ;;  %v1221_v13 = vsub.f32 %v3396_v51, %v3404_v58  ;;  %v1238_v51 = vmul.f32 1.442695, %v1218_v42 }
 0x39f   : > { %v1189_v31 = vpop.xlane.xlu1 %1188  ;;  %v3435_v34 = vmax.f32 %v3423_v23, %v1183_v29  ;;  %v3510_v35 = vpop.eup %2744 }
 0x3a0   : > { %v3438_v36 = vmax.f32 %v3428_v26, %v1189_v31  ;;  %v1232_v31 = vmul.f32 1.442695, %v1215_v24  ;;  %v1244_v45 = vmul.f32 1.442695, %v1221_v13 }
 0x3a1   : > { %1752 = vst.msk [vmem:[#allocation3 + $0x40] sm:$0xff] %vm1470_vm3, %v3435_v34  ;;  %1284 = vperm.xlu1 %2743, %v3401_v56  }
 0x3a2   : > { %1755 = vst.msk [vmem:[#allocation3 + $0x58] sm:$0xff] %vm1470_vm3, %v3438_v36  ;;  %v1187_v49 = vpop.xlane.xlu0 %1186  ;;  %2748 = vpow2.f32 %v1232_v31  ;;  %v1225_v32 = vsub.f32 %v3428_v26, %v3438_v36  ;;  %v3518_v46 = vpop.eup %2746 }
 0x3a3   : > { %v1185_v53 = vpop.xlane.xlu1 %1184  ;;  %v3454_v54 = vmax.f32 %v3440_v40, %v1187_v49 }
 0x3a4   : > { %v3457_v55 = vmax.f32 %v3445_v44, %v1185_v53  ;;  %v1252_v48 = vmul.f32 1.442695, %v1225_v32 }
 0x3a5   : > { %1754 = vst.msk [vmem:[#allocation3 + $0x50] sm:$0xff] %vm1470_vm3, %v3454_v54  ;;  %1289 = vperm.xlu1 %2743, %v3421_v22   ;;  %v1240_v22 = vmul.f32 1.442695, %v1219_v27 }
 0x3a6   : > { %1753 = vst.msk [vmem:[#allocation3 + $0x48] sm:$0xff] %vm1470_vm3, %v3457_v55  ;;  %1309 = vperm.xlu0 %2742, %v3457_v55   ;;  %v1191_v33 = vpop.xlane.xlu0 %1190  ;;  %v1223_v56 = vsub.f32 %v3445_v44, %v3457_v55  ;;  %v1222_v44 = vsub.f32 %v3423_v23, %v3435_v34 }
 0x3a7   : > { %v1197_v7 = vpop.xlane.xlu1 %1196  ;;  %v3472_v17 = vmax.f32 %v3459_v57, %v1191_v33  ;;  %2750 = vpow2.f32 %v1240_v22 }
 0x3a8   : > { %v3475_v18 = vmax.f32 %v3464_v16, %v1197_v7  ;;  %2752 = vpow2.f32 %v1234_v41  ;;  %v1246_v55 = vmul.f32 1.442695, %v1222_v44 }
 0x3a9   : > { %1756 = vst.msk [vmem:[#allocation3 + $0x60] sm:$0xff] %vm1470_vm3, %v3472_v17  ;;  %1299 = vperm.xlu1 %2743, %v3404_v58   ;;  %v1220_v58 = vsub.f32 %v3407_v59, %v3418_v20  ;;  %2754 = vpow2.f32 %v1244_v45  ;;  %v1248_v59 = vmul.f32 1.442695, %v1223_v56  ;;  %v1226_v60 = vsub.f32 %v3459_v57, %v3472_v17 }
 0x3aa   : > { %v1229_v38 = vsub.f32 %v3464_v16, %v3475_v18  ;;  %1759 = vst.msk [vmem:[#allocation3 + $0x78] sm:$0xff] %vm1470_vm3, %v3475_v18  ;;  %1319 = vperm.xlu0 %2742, %v3438_v36   ;;  %v1195_v43 = vpop.xlane.xlu0 %1194  ;;  %2756 = vpow2.f32 %v1238_v51  ;;  %v1224_v36 = vsub.f32 %v3440_v40, %v3454_v54 }
 0x3ab   : > { %v1193_v28 = vpop.xlane.xlu1 %1192  ;;  %v3492_v29 = vmax.f32 %v3477_v19, %v1195_v43  ;;  %v1242_v26 = vmul.f32 1.442695, %v1220_v58  ;;  %2758 = vpow2.f32 %v1252_v48  ;;  %v1254_v33 = vmul.f32 1.442695, %v1226_v60 }
 0x3ac   : > { %v1211_v30 = vmax.f32 %v1163_v21, %v1193_v28  ;;  %v3524_v49 = vpop.eup %2748  ;;  %v1250_v52 = vmul.f32 1.442695, %v1224_v36 }
 0x3ad   : > { %v1228_v39 = vsub.f32 %v3477_v19, %v3492_v29  ;;  %1758 = vst.msk [vmem:[#allocation3 + $0x70] sm:$0xff] %vm1470_vm3, %v3492_v29  ;;  %1304 = vperm.xlu1 %2743, %v3435_v34   ;;  %2760 = vpow2.f32 %v1242_v26 }
 0x3ae   : > { %1757 = vst.msk [vmem:[#allocation3 + $0x68] sm:$0xff] %vm1470_vm3, %v1211_v30  ;;  %1329 = vperm.xlu0 %2742, %v1211_v30   ;;  %v1227_v20 = vsub.f32 %v1163_v21, %v1211_v30  ;;  %2762 = vpow2.f32 %v1248_v59 }
 0x3af   : > { %2764 = vpow2.f32 %v1250_v52 }
 0x3b0   : > { %v1256_v40 = vmul.f32 1.442695, %v1227_v20 }
 0x3b1   : > { %1314 = vperm.xlu1 %2743, %v3454_v54   ;;  %v3526_v50 = vpop.eup %2750 }
 0x3b2   : > { %1339 = vperm.xlu0 %2742, %v3475_v18   ;;  %v3532_v53 = vpop.eup %2752  ;;  %2766 = vpow2.f32 %v1256_v40 }
 0x3b3   : > { %v3534_v54 = vpop.eup %2754  ;;  %2768 = vpow2.f32 %v1246_v55 }
 0x3b4   : > { %v3540_v23 = vpop.eup %2756  ;;  %2770 = vpow2.f32 %v1254_v33 }
 0x3b5   : > { %1324 = vperm.xlu1 %2743, %v3472_v17   ;;  %v3542_v34 = vpop.eup %2758 }
 0x3b6   : > { %1505 = vperm.xlu0 %2742, %v3510_v35  }
 0x3b7   : > { %v3546_v37 = vpop.eup %2760 }
 0x3b8   : > { %v3548_v61 = vpop.eup %2762 }
 0x3b9   : > { %1334 = vperm.xlu1 %2743, %v3492_v29   ;;  %v3552_v57 = vpop.eup %2764 }
 0x3ba   : > { %1520 = vperm.xlu0 %2742, %v3518_v46  }
 0x3bc   : > { %v3554_v7 = vpop.eup %2766 }
 0x3bd   : > { %1510 = vperm.xlu1 %2743, %v3524_v49   ;;  %v3558_v17 = vpop.eup %2768 }
 0x3be   : > { %1530 = vperm.xlu0 %2742, %v3526_v50   ;;  %v3561_v21 = vpop.eup %2770 }
 0x3c1   : > { %1515 = vperm.xlu1 %2743, %v3532_v53  }
 0x3c2   : > { %1540 = vperm.xlu0 %2742, %v3534_v54  }
 0x3c5   : > { %1525 = vperm.xlu1 %2743, %v3540_v23  }
 0x3c6   : > { %1560 = vperm.xlu0 %2742, %v3542_v34  }
 0x3c9   : > { %1535 = vperm.xlu1 %2743, %v3546_v37  }
 0x3ca   : > { %1550 = vperm.xlu0 %2742, %v3548_v61  }
 0x3cd   : > { %1555 = vperm.xlu1 %2743, %v3552_v57  }
 0x3ce   : > { %1570 = vperm.xlu0 %2742, %v3554_v7  }
 0x3d1   : > { %1545 = vperm.xlu1 %2743, %v3558_v17  }
 0x3d5   : > { %1565 = vperm.xlu1 %2743, %v3561_v21  }
 0x40f   : > { %v1275_v24 = vpop.permute.xlu1 %1274 }
 0x410   : > { %v1344_v43 = vsub.f32 %v3302_v62, %v1275_v24  ;;  %v1265_v25 = vpop.permute.xlu0 %1264 }
 0x411   : > { %v1342_v27 = vsub.f32 %v3305_v63, %v1265_v25 }
 0x412   : > { %v1362_v28 = vmul.f32 1.442695, %v1344_v43 }
 0x413   : > { %v1358_v30 = vmul.f32 1.442695, %v1342_v27  ;;  %v1280_v47 = vpop.permute.xlu1 %1279 }
 0x414   : > { %2772 = vpow2.f32 %v1362_v28  ;;  %v1345_v31 = vsub.f32 %v3308_v0, %v1280_v47 }
 0x415   : > { %2774 = vpow2.f32 %v1358_v30 }
 0x416   : > { %v1364_v13 = vmul.f32 1.442695, %v1345_v31 }
 0x417   : > { %v1270_v22 = vpop.permute.xlu1 %1269 }
 0x418   : > { %2776 = vpow2.f32 %v1364_v13  ;;  %v1343_v41 = vsub.f32 %v3310_v1, %v1270_v22 }
 0x41a   : > { %v1360_v42 = vmul.f32 1.442695, %v1343_v41 }
 0x41c   : > { %2778 = vpow2.f32 %v1360_v42  ;;  %v1295_v45 = vpop.permute.xlu1 %1294 }
 0x41d   : > { %v1348_v62 = vsub.f32 %v3314_v2, %v1295_v45 }
 0x41e   : > { %v2773_v32 = vpop.eup %2772 }
 0x41f   : > { %v2775_v51 = vpop.eup %2774  ;;  %v1370_v63 = vmul.f32 1.442695, %v1348_v62  ;;  %1426 = vadd.xlane.f32.xlu0 %v2773_v32 }
 0x420   : > { %1422 = vadd.xlane.f32.xlu1 %v2775_v51  ;;  %v1285_v58 = vpop.permute.xlu1 %1284 }
 0x421   : > { %2780 = vpow2.f32 %v1370_v63  ;;  %v1346_v0 = vsub.f32 %v3316_v3, %v1285_v58 }
 0x422   : > { %v2777_v48 = vpop.eup %2776 }
 0x423   : > { %v1366_v56 = vmul.f32 1.442695, %v1346_v0  ;;  %v1600_v26 = vpack.c.bf16 %v2777_v48, %v2773_v32 }
 0x424   : > { %1428 = vadd.xlane.f32.xlu1 %v2777_v48  ;;  %v1290_v36 = vpop.permute.xlu1 %1289 }
 0x425   : > { %2782 = vpow2.f32 %v1366_v56  ;;  %v1347_v1 = vsub.f32 %v3322_v5, %v1290_v36  ;;  %v1310_v59 = vpop.permute.xlu0 %1309 }
 0x426   : > { %v2779_v20 = vpop.eup %2778  ;;  %v1351_v52 = vsub.f32 %v3334_v10, %v1310_v59 }
 0x427   : > { %v1368_v2 = vmul.f32 1.442695, %v1347_v1  ;;  %1424 = vadd.xlane.f32.xlu0 %v2779_v20  ;;  %v1599_v44 = vpack.c.bf16 %v2779_v20, %v2775_v51 }
 0x428   : > { %v1300_v40 = vpop.permute.xlu1 %1299  ;;  %v1376_v24 = vmul.f32 1.442695, %v1351_v52  ;;  %v1258_v52 = vmul.f32 1.442695, %v1228_v39 }
 0x429   : > { %2784 = vpow2.f32 %v1368_v2  ;;  %v1349_v55 = vsub.f32 %v3319_v4, %v1300_v40  ;;  %v1320_v3 = vpop.permute.xlu0 %1319  ;;  %2527 = vmatprep.mubr.bf16.mxu1 %v1599_v44  ;;  %v1260_v40 = vmul.f32 1.442695, %v1229_v38 }
 0x42a   : > { %2528 = vmatmul.mubr.bf16.vlgmr.msra.gmra.mrb[16].mxu1 %v1600_v26  ;;  %v1353_v43 = vsub.f32 %v3330_v9, %v1320_v3 }
 0x42b   : > { %v2781_v60 = vpop.eup %2780  ;;  %v1372_v33 = vmul.f32 1.442695, %v1349_v55 }
 0x42c   : > { %1434 = vadd.xlane.f32.xlu0 %v2781_v60  ;;  %v1305_v5 = vpop.permute.xlu1 %1304  ;;  %v1380_v30 = vmul.f32 1.442695, %v1353_v43 }
 0x42d   : > { %2786 = vpow2.f32 %v1372_v33  ;;  %v1350_v25 = vsub.f32 %v3328_v8, %v1305_v5  ;;  %v1330_v27 = vpop.permute.xlu0 %1329 }
 0x42e   : > { %2788 = vpow2.f32 %v1376_v24  ;;  %v1355_v4 = vsub.f32 %v3346_v15, %v1330_v27 }
 0x42f   : > { %v2783_v28 = vpop.eup %2782  ;;  %v1374_v10 = vmul.f32 1.442695, %v1350_v25 }
 0x430   : > { %1430 = vadd.xlane.f32.xlu0 %v2783_v28  ;;  %v1315_v47 = vpop.permute.xlu1 %1314  ;;  %v1384_v41 = vmul.f32 1.442695, %v1355_v4 }
 0x431   : > { %2790 = vpow2.f32 %v1374_v10  ;;  %v1352_v31 = vsub.f32 %v3326_v6, %v1315_v47  ;;  %v1340_v13 = vpop.permute.xlu0 %1339 }
 0x432   : > { %2792 = vpow2.f32 %v1380_v30  ;;  %v1357_v42 = vsub.f32 %v3342_v14, %v1340_v13  ;;  %v1390_v30 = vld [vmem:[#allocation4] sm:$0xff] }
 0x433   : > { %v2785_v22 = vpop.eup %2784  ;;  %v1378_v9 = vmul.f32 1.442695, %v1352_v31  ;;  %v1406_v31 = vmul.f32 %v3510_v35, %v1390_v30  ;;  %v1396_v35 = vld [vmem:[#allocation4 + $0x30] sm:$0xff] }
 0x434   : > { %v1325_v8 = vpop.permute.xlu1 %1324  ;;  %v1601_v45 = vpack.c.bf16 %v2785_v22, %v2783_v28  ;;  %v1388_v51 = vmul.f32 1.442695, %v1357_v42  ;;  %v1392_v28 = vld [vmem:[#allocation4 + $0x10] sm:$0xff] }
 0x435   : > { %2794 = vpow2.f32 %v1378_v9  ;;  %v1354_v62 = vsub.f32 %v3340_v12, %v1325_v8  ;;  %v1408_v4 = vmul.f32 %v3532_v53, %v1392_v28  ;;  %v1393_v9 = vld [vmem:[#allocation4 + $0x18] sm:$0xff]  ;;  %v1391_v8 = vld [vmem:[#allocation4 + $0x8] sm:$0xff] }
 0x436   : > { %2531 = vmatprep.mubr.bf16.mxu1 %v1601_v45  ;;  %2796 = vpow2.f32 %v1384_v41  ;;  %v1409_v42 = vmul.f32 %v3518_v46, %v1393_v9 }
 0x437   : > { %v2787_v32 = vpop.eup %2786  ;;  %v1382_v15 = vmul.f32 1.442695, %v1354_v62 }
 0x438   : > { %1436 = vadd.xlane.f32.xlu1 %v2787_v32  ;;  %v1335_v63 = vpop.permute.xlu1 %1334  ;;  %v1602_v6 = vpack.c.bf16 %v2787_v32, %v2781_v60  ;;  %v2789_v0 = vpop.eup %2788  ;;  %v1407_v32 = vmul.f32 %v3524_v49, %v1391_v8  ;;  %v1397_v49 = vld [vmem:[#allocation4 + $0x38] sm:$0xff]  ;;  %v1402_v8 = vld [vmem:[#allocation4 + $0x60] sm:$0xff] }
 0x439   : > { %2798 = vpow2.f32 %v1382_v15  ;;  %v1356_v58 = vsub.f32 %v3338_v11, %v1335_v63  ;;  %v3592_v60 = vpop.permute.xlu0 %1505 }
 0x43a   : > { %2532 = vmatmul.mubr.bf16.gmra.mrb[20].mxu1 %v1602_v6  ;;  %2800 = vpow2.f32 %v1388_v51  ;;  %v1412_v51 = vmul.f32 %v3546_v37, %v1396_v35  ;;  %v1394_v6 = vld [vmem:[#allocation4 + $0x20] sm:$0xff] }
 0x43b   : > { %v2791_v48 = vpop.eup %2790  ;;  %v1386_v14 = vmul.f32 1.442695, %v1356_v58  ;;  %v1410_v46 = vmul.f32 %v3540_v23, %v1394_v6  ;;  %v1488_v6 = vld [vmem:[#allocation5 + $0x8] sm:$0xff] }
 0x43c   : > { %1432 = vadd.xlane.f32.xlu1 %v2785_v22  ;;  %v1603_v56 = vpack.c.bf16 %v2789_v0, %v2791_v48  ;;  %v2793_v12 = vpop.eup %2792  ;;  %v3594_v33 = vpop.permute.xlu1 %1510 }
 0x43d   : > { %2802 = vpow2.f32 %v1386_v14  ;;  %v3596_v19 = vpop.permute.xlu0 %1520  ;;  %v1413_v14 = vmul.f32 %v3534_v54, %v1397_v49  ;;  %v1398_v54 = vld [vmem:[#allocation4 + $0x40] sm:$0xff]  ;;  %v1584_v49 = vmul.f32 %v3594_v33, %v1488_v6 }
 0x43e   : > { %2535 = vmatprep.mubr.bf16.mxu1 %v1603_v56  ;;  %2804 = vpow2.f32 %v1258_v52  ;;  %v1399_v52 = vld [vmem:[#allocation4 + $0x48] sm:$0xff] }
 0x43f   : > { %v2795_v26 = vpop.eup %2794  ;;  %2806 = vpow2.f32 %v1260_v40  ;;  %v1415_v30 = vmul.f32 %v3548_v61, %v1399_v52 }
 0x440   : > { %1444 = vadd.xlane.f32.xlu1 %v2793_v12  ;;  %1442 = vadd.xlane.f32.xlu0 %v2795_v26  ;;  %v1604_v36 = vpack.c.bf16 %v2793_v12, %v2795_v26  ;;  %v2797_v1 = vpop.eup %2796  ;;  %v3598_v29 = vpop.permute.xlu1 %1515  ;;  %v1395_v12 = vld [vmem:[#allocation4 + $0x28] sm:$0xff] }
 0x441   : > { %v3600_v39 = vpop.permute.xlu0 %1530  ;;  %v1411_v37 = vmul.f32 %v3526_v50, %v1395_v12  ;;  %v1414_v50 = vmul.f32 %v3558_v17, %v1398_v54  ;;  %v1403_v17 = vld [vmem:[#allocation4 + $0x68] sm:$0xff] }
 0x442   : > { %2536 = vmatmul.mubr.bf16.gmra.mrb[24].mxu1 %v1604_v36 }
 0x443   : > { %v2799_v59 = vpop.eup %2798 }
 0x444   : > { %1440 = vadd.xlane.f32.xlu1 %v2789_v0  ;;  %1438 = vadd.xlane.f32.xlu0 %v2791_v48  ;;  %v1605_v11 = vpack.c.bf16 %v2797_v1, %v2799_v59  ;;  %v2801_v20 = vpop.eup %2800  ;;  %v3602_v16 = vpop.permute.xlu1 %1525 }
 0x445   : > { %v3604_v18 = vpop.permute.xlu0 %1540 }
 0x446   : > { %2539 = vmatprep.mubr.bf16.mxu1 %v1605_v11 }
 0x447   : > { %v2803_v2 = vpop.eup %2802 }
 0x448   : > { %1452 = vadd.xlane.f32.xlu1 %v2801_v20  ;;  %1450 = vadd.xlane.f32.xlu0 %v2803_v2  ;;  %v1606_v44 = vpack.c.bf16 %v2801_v20, %v2803_v2  ;;  %v3586_v55 = vpop.eup %2804  ;;  %v3606_v38 = vpop.permute.xlu1 %1535 }
 0x449   : > { %v3589_v3 = vpop.eup %2806  ;;  %v3608_v24 = vpop.permute.xlu0 %1560 }
 0x44a   : > { %2540 = vmatmul.mubr.bf16.gmra.mrb[28].mxu1 %v1606_v44 }
 0x44c   : > { %1448 = vadd.xlane.f32.xlu1 %v2797_v1  ;;  %1446 = vadd.xlane.f32.xlu0 %v2799_v59  ;;  %v3610_v43 = vpop.permute.xlu1 %1555  ;;  %v1400_v1 = vld [vmem:[#allocation4 + $0x50] sm:$0xff]  ;;  %v1401_v59 = vld [vmem:[#allocation4 + $0x58] sm:$0xff] }
 0x44d   : > { %v3612_v5 = vpop.permute.xlu0 %1550  ;;  %v1416_v23 = vmul.f32 %v3552_v57, %v1400_v1  ;;  %v1417_v20 = vmul.f32 %v3542_v34, %v1401_v59  ;;  %v1405_v57 = vld [vmem:[#allocation4 + $0x78] sm:$0xff] }
 0x44e   : > { %v1421_v9 = vmul.f32 %v3589_v3, %v1405_v57  ;;  %v1494_v1 = vld [vmem:[#allocation5 + $0x38] sm:$0xff] }
 0x44f   : > { %v1590_v33 = vmul.f32 %v3604_v18, %v1494_v1 }
 0x450   : > { %v3614_v25 = vpop.permute.xlu1 %1545 }
 0x451   : > { %v3616_v27 = vpop.permute.xlu0 %1570 }
 0x454   : > { %v3618_v10 = vpop.permute.xlu1 %1565 }
 0x45d   : > { %1575 = vperm.xlu1 %2743, %v3586_v55  }
 0x462   : > { %1580 = vperm.xlu0 %2742, %v3589_v3   ;;  %v1489_v3 = vld [vmem:[#allocation5 + $0x10] sm:$0xff] }
 0x4ac   : > { %v1427_v47 = vpop.xlane.xlu0 %1426 }
 0x4ad   : > { %v1456_v13 = vadd.f32 %v1427_v47, %v1408_v4  ;;  %v1423_v22 = vpop.xlane.xlu1 %1422 }
 0x4ae   : > { %v1454_v41 = vadd.f32 %v1423_v22, %v1406_v31  ;;  %v1404_v31 = vld [vmem:[#allocation4 + $0x70] sm:$0xff] }
 0x4af   : > { %1473 = vst.msk [vmem:[#allocation4 + $0x10] sm:$0xff] %vm1470_vm3, %v1456_v13  ;;  %v1420_v22 = vmul.f32 %v3586_v55, %v1404_v31 }
 0x4b0   : > { %1471 = vst.msk [vmem:[#allocation4] sm:$0xff] %vm1470_vm3, %v1454_v41 }
 0x4b1   : > { %v1429_v45 = vpop.xlane.xlu1 %1428 }
 0x4b2   : > { %v1457_v62 = vadd.f32 %v1429_v45, %v1409_v42 }
 0x4b4   : > { %1474 = vst.msk [vmem:[#allocation4 + $0x18] sm:$0xff] %vm1470_vm3, %v1457_v62  ;;  %v1425_v53 = vpop.xlane.xlu0 %1424  ;;  %v1418_v62 = vmul.f32 %v3561_v21, %v1402_v8 }
 0x4b5   : > { %v1455_v15 = vadd.f32 %v1425_v53, %v1407_v32  ;;  %v1419_v32 = vmul.f32 %v3554_v7, %v1403_v17 }
 0x4b7   : > { %1472 = vst.msk [vmem:[#allocation4 + $0x8] sm:$0xff] %vm1470_vm3, %v1455_v15 }
 0x4b9   : > { %v1435_v63 = vpop.xlane.xlu0 %1434 }
 0x4ba   : > { %v1460_v58 = vadd.f32 %v1435_v63, %v1412_v51  ;;  %v1487_v51 = vld [vmem:[#allocation5] sm:$0xff]  ;;  %v1490_v63 = vld [vmem:[#allocation5 + $0x18] sm:$0xff] }
 0x4bb   : > { %v1586_v21 = vmul.f32 %v3596_v19, %v1490_v63  ;;  %v1783_v1 = vld [vmem:[#allocation4 + $0x18] sm:$0xff] (!%p2278_p3) }
 0x4bc   : > { %1477 = vst.msk [vmem:[#allocation4 + $0x30] sm:$0xff] %vm1470_vm3, %v1460_v58  ;;  %v1585_v58 = vmul.f32 %v3598_v29, %v1489_v3  ;;  %v1491_v29 = vld [vmem:[#allocation5 + $0x20] sm:$0xff] }
 0x4bd   : > { %v1431_v0 = vpop.xlane.xlu0 %1430  ;;  %v1587_v19 = vmul.f32 %v3602_v16, %v1491_v29  ;;  %v1496_v16 = vld [vmem:[#allocation5 + $0x48] sm:$0xff] }
 0x4be   : > { %v1458_v48 = vadd.f32 %v1431_v0, %v1410_v46  ;;  %v1583_v46 = vmul.f32 %v3592_v60, %v1487_v51  ;;  %v1492_v60 = vld [vmem:[#allocation5 + $0x28] sm:$0xff] }
 0x4c0   : > { %1475 = vst.msk [vmem:[#allocation4 + $0x20] sm:$0xff] %vm1470_vm3, %v1458_v48 }
 0x4c5   : > { %v1437_v56 = vpop.xlane.xlu1 %1436 }
 0x4c6   : > { %v1461_v26 = vadd.f32 %v1437_v56, %v1413_v14 }
 0x4c8   : > { %1478 = vst.msk [vmem:[#allocation4 + $0x38] sm:$0xff] %vm1470_vm3, %v1461_v26 }
 0x4c9   : > { %v1433_v36 = vpop.xlane.xlu1 %1432 }
 0x4ca   : > { %v1459_v11 = vadd.f32 %v1433_v36, %v1411_v37  ;;  %v1493_v36 = vld [vmem:[#allocation5 + $0x30] sm:$0xff] }
 0x4cb   : > { %v1589_v59 = vmul.f32 %v3606_v38, %v1493_v36  ;;  %v1498_v38 = vld [vmem:[#allocation5 + $0x58] sm:$0xff]  ;;  %v1913_v36 = vld [vmem:[%s3810_s6 + $0x28] sm:$0xff] (!%p2278_p3) }
 0x4cc   : > { %1476 = vst.msk [vmem:[#allocation4 + $0x28] sm:$0xff] %vm1470_vm3, %v1459_v11 }
 0x4cd   : > { %v1443_v2 = vpop.xlane.xlu0 %1442  ;;  %v1445_v44 = vpop.xlane.xlu1 %1444 }
 0x4ce   : > { %v1464_v40 = vadd.f32 %v1443_v2, %v1416_v23  ;;  %v1465_v28 = vadd.f32 %v1445_v44, %v1417_v20  ;;  %v1588_v2 = vmul.f32 %v3600_v39, %v1492_v60  ;;  %v1594_v39 = vmul.f32 %v3608_v24, %v1498_v38 }
 0x4d0   : > { %1481 = vst.msk [vmem:[#allocation4 + $0x50] sm:$0xff] %vm1470_vm3, %v1464_v40  ;;  %1482 = vst.msk [vmem:[#allocation4 + $0x58] sm:$0xff] %vm1470_vm3, %v1465_v28  ;;  %v1497_v28 = vld [vmem:[#allocation5 + $0x50] sm:$0xff] }
 0x4d1   : > { %v1439_v4 = vpop.xlane.xlu0 %1438  ;;  %v1441_v47 = vpop.xlane.xlu1 %1440 }
 0x4d2   : > { %v1462_v13 = vadd.f32 %v1439_v4, %v1414_v50  ;;  %v1463_v34 = vadd.f32 %v1441_v47, %v1415_v30  ;;  %v1495_v30 = vld [vmem:[#allocation5 + $0x40] sm:$0xff]  ;;  %v1593_v4 = vmul.f32 %v3610_v43, %v1497_v28  ;;  %v1502_v43 = vld [vmem:[#allocation5 + $0x78] sm:$0xff] }
 0x4d3   : > { %v1591_v18 = vmul.f32 %v3614_v25, %v1495_v30  ;;  %v1785_v30 = vld [vmem:[#allocation4 + $0x28] sm:$0xff] (!%p2278_p3) }
 0x4d4   : > { %1479 = vst.msk [vmem:[#allocation4 + $0x40] sm:$0xff] %vm1470_vm3, %v1462_v13  ;;  %1480 = vst.msk [vmem:[#allocation4 + $0x48] sm:$0xff] %vm1470_vm3, %v1463_v34  ;;  %v1592_v13 = vmul.f32 %v3612_v5, %v1496_v16 }
 0x4d5   : > { %v1451_v41 = vpop.xlane.xlu0 %1450  ;;  %v1453_v42 = vpop.xlane.xlu1 %1452 }
 0x4d6   : > { %v1468_v45 = vadd.f32 %v1451_v41, %v1420_v22  ;;  %v1469_v61 = vadd.f32 %v1453_v42, %v1421_v9  ;;  %v1501_v42 = vld [vmem:[#allocation5 + $0x70] sm:$0xff] }
 0x4d7   : > { %v1791_v29 = vld [vmem:[#allocation4 + $0x58] sm:$0xff] (!%p2278_p3) }
 0x4d8   : > { %1485 = vst.msk [vmem:[#allocation4 + $0x70] sm:$0xff] %vm1470_vm3, %v1468_v45  ;;  %1486 = vst.msk [vmem:[#allocation4 + $0x78] sm:$0xff] %vm1470_vm3, %v1469_v61  ;;  %v1499_v45 = vld [vmem:[#allocation5 + $0x60] sm:$0xff]  ;;  %v1500_v61 = vld [vmem:[#allocation5 + $0x68] sm:$0xff] }
 0x4d9   : > { %v1447_v53 = vpop.xlane.xlu0 %1446  ;;  %v1449_v15 = vpop.xlane.xlu1 %1448 }
 0x4da   : > { %v1466_v35 = vadd.f32 %v1447_v53, %v1418_v62  ;;  %v1467_v55 = vadd.f32 %v1449_v15, %v1419_v32  ;;  %v1595_v62 = vmul.f32 %v3618_v10, %v1499_v45  ;;  %v1780_v10 = vld [vmem:[#allocation4] sm:$0xff] (!%p2278_p3)  ;;  %v1922_v45 = vld [vmem:[%s3810_s6 + $0x70] sm:$0xff] (!%p2278_p3) }
 0x4dc   : > { %1483 = vst.msk [vmem:[#allocation4 + $0x60] sm:$0xff] %vm1470_vm3, %v1466_v35  ;;  %1484 = vst.msk [vmem:[#allocation4 + $0x68] sm:$0xff] %vm1470_vm3, %v1467_v55  ;;  %v1596_v35 = vmul.f32 %v3616_v27, %v1500_v61  ;;  %v1788_v27 = vld [vmem:[#allocation4 + $0x40] sm:$0xff] (!%p2278_p3) }
 0x4dd   : > { %v1576_v8 = vpop.permute.xlu1 %1575 }
 0x4de   : > { %v1597_v24 = vmul.f32 %v1576_v8, %v1501_v42  ;;  %v1787_v42 = vld [vmem:[#allocation4 + $0x38] sm:$0xff] (!%p2278_p3) }
 0x4e1   : > { %v1581_v25 = vpop.permute.xlu0 %1580 }
 0x4e2   : > { %v1598_v5 = vmul.f32 %v1581_v25, %v1502_v43  ;;  %v1923_v43 = vld [vmem:[%s3810_s6 + $0x78] sm:$0xff] (!%p2278_p3) }
 0x4e3   : > { %v1793_v28 = vld [vmem:[#allocation4 + $0x68] sm:$0xff] (!%p2278_p3) }
 0x4fd   : > { %v2529_v0 = vpop.f32.mrb[16].mxu1 }
 0x4fe   : > { %v1714_v7 = vadd.f32 %v2529_v0, %v1585_v58  ;;  %v1649_v48 = vpop.f32.mrb[17].mxu1  ;;  %v1781_v58 = vld [vmem:[#allocation4 + $0x8] sm:$0xff] (!%p2278_p3)  ;;  %v2957_v0 = vmov (!%p2278_p3), 0  }
 0x4ff   : > { %v1712_v14 = vadd.f32 %v1649_v48, %v1583_v46  ;;  %v2530_v56 = vpop.f32.mrb[18].mxu1  ;;  %v1789_v46 = vld [vmem:[#allocation4 + $0x48] sm:$0xff] (!%p2278_p3)  ;;  %2809 = vset.pattern.permute.xlu1 (!%p2278_p3), %v2957_v0  ;;  %2808 = vset.pattern.permute.xlu0 (!%p2278_p3), %v2957_v0  ;;  %2810 = vrcp.f32 (!%p2278_p3), %v1781_v58  ;;  %v1908_v48 = vld [vmem:[%s3810_s6] sm:$0xff] (!%p2278_p3) }
 0x500   : > { %1730 = vst [vmem:[#allocation5 + $0x10] sm:$0xff] %v1714_v7  ;;  %v1715_v12 = vadd.f32 %v2530_v56, %v1586_v21  ;;  %v1652_v26 = vpop.f32.mrb[19].mxu1  ;;  %2812 = vrcp.f32 (!%p2278_p3), %v1780_v10  ;;  %v1790_v21 = vld [vmem:[#allocation4 + $0x50] sm:$0xff] (!%p2278_p3) }
 0x501   : > { %1728 = vst [vmem:[#allocation5] sm:$0xff] %v1712_v14  ;;  %v1713_v37 = vadd.f32 %v1652_v26, %v1584_v49  ;;  %2814 = vrcp.f32 (!%p2278_p3), %v1789_v46  ;;  %v1782_v7 = vld [vmem:[#allocation4 + $0x10] sm:$0xff] (!%p2278_p3)  ;;  %v1909_v49 = vld [vmem:[%s3810_s6 + $0x8] sm:$0xff] (!%p2278_p3) }
 0x502   : > { %1731 = vst [vmem:[#allocation5 + $0x18] sm:$0xff] %v1715_v12  ;;  %2816 = vrcp.f32 (!%p2278_p3), %v1788_v27  ;;  %v2599_v14 = vpack.c.bf16 (!%p2278_p3), %v1909_v49, %v1908_v48  ;;  %v1910_v56 = vld [vmem:[%s3810_s6 + $0x10] sm:$0xff] (!%p2278_p3)  ;;  %v1911_v12 = vld [vmem:[%s3810_s6 + $0x18] sm:$0xff] (!%p2278_p3) }
 0x503   : > { %1729 = vst [vmem:[#allocation5 + $0x8] sm:$0xff] %v1713_v37  ;;  %2818 = vrcp.f32 (!%p2278_p3), %v1790_v21  ;;  %v2603_v26 = vpack.c.bf16 (!%p2278_p3), %v1911_v12, %v1910_v56  ;;  %v1912_v37 = vld [vmem:[%s3810_s6 + $0x20] sm:$0xff] (!%p2278_p3) }
 0x504   : > { %2820 = vrcp.f32 (!%p2278_p3), %v1782_v7  ;;  %2600 = vmatprep.subr.bf16.mxu0 (!%p2278_p3), %v2599_v14  ;;  %2633 = vmatprep.subr.bf16.mxu1 (!%p2278_p3), %v2599_v14  ;;  %v2607_v60 = vpack.c.bf16 (!%p2278_p3), %v1913_v36, %v1912_v37 }
 0x505   : > { %2602 = vmatpush3.bf16.msra.mxu0 (!%p2278_p3), %v2599_v14  ;;  %2641 = vmatpush3.bf16.msra.mxu1 (!%p2278_p3), %v2599_v14  ;;  %2822 = vrcp.f32 (!%p2278_p3), %v1791_v29 }
 0x506   : > { %2604 = vmatprep.subr.bf16.mxu0 (!%p2278_p3), %v2603_v26  ;;  %2634 = vmatprep.subr.bf16.mxu1 (!%p2278_p3), %v2603_v26  ;;  %2824 = vrcp.f32 (!%p2278_p3), %v1783_v1 }
 0x507   : > { %v1766_v7 = vld [vmem:[#allocation5 + $0x10] sm:$0xff] (!%p2278_p3) }
 0x509   : > { %2606 = vmatpush3.bf16.msra.mxu0 (!%p2278_p3), %v2603_v26  ;;  %2642 = vmatpush3.bf16.msra.mxu1 (!%p2278_p3), %v2603_v26  ;;  %v1767_v26 = vld [vmem:[#allocation5 + $0x18] sm:$0xff] (!%p2278_p3) }
 0x50a   : > { %2608 = vmatprep.subr.bf16.mxu0 (!%p2278_p3), %v2607_v60  ;;  %2635 = vmatprep.subr.bf16.mxu1 (!%p2278_p3), %v2607_v60 }
 0x50d   : > { %v2533_v11 = vpop.f32.mrb[20].mxu1  ;;  %2610 = vmatpush3.bf16.msra.mxu0 (!%p2278_p3), %v2607_v60  ;;  %2643 = vmatpush3.bf16.msra.mxu1 (!%p2278_p3), %v2607_v60 }
 0x50e   : > { %v1718_v23 = vadd.f32 %v2533_v11, %v1589_v59  ;;  %v1665_v20 = vpop.f32.mrb[21].mxu1  ;;  %v2811_v59 = vpop.eup (!%p2278_p3), %2810  ;;  %v1915_v11 = vld [vmem:[%s3810_s6 + $0x38] sm:$0xff] (!%p2278_p3) }
 0x50f   : > { %v1716_v44 = vadd.f32 %v1665_v20, %v1587_v19  ;;  %v2534_v54 = vpop.f32.mrb[22].mxu1  ;;  %v1914_v19 = vld [vmem:[%s3810_s6 + $0x30] sm:$0xff] (!%p2278_p3)  ;;  %1819 = vperm.xlu1 (!%p2278_p3), %2809, %v2811_v59  }
 0x510   : > { %1734 = vst [vmem:[#allocation5 + $0x30] sm:$0xff] %v1718_v23  ;;  %v1719_v52 = vadd.f32 %v2534_v54, %v1590_v33  ;;  %v1668_v40 = vpop.f32.mrb[23].mxu1  ;;  %v2813_v33 = vpop.eup (!%p2278_p3), %2812  ;;  %v1792_v23 = vld [vmem:[#allocation4 + $0x60] sm:$0xff] (!%p2278_p3)  ;;  %v2611_v54 = vpack.c.bf16 (!%p2278_p3), %v1915_v11, %v1914_v19 }
 0x511   : > { %1732 = vst [vmem:[#allocation5 + $0x20] sm:$0xff] %v1716_v44  ;;  %v1717_v50 = vadd.f32 %v1668_v40, %v1588_v2  ;;  %v2815_v20 = vpop.eup (!%p2278_p3), %2814  ;;  %1814 = vperm.xlu0 (!%p2278_p3), %2808, %v2813_v33   ;;  %v1784_v2 = vld [vmem:[#allocation4 + $0x20] sm:$0xff] (!%p2278_p3)  ;;  %2826 = vrcp.f32 (!%p2278_p3), %v1792_v23  ;;  %v1917_v40 = vld [vmem:[%s3810_s6 + $0x48] sm:$0xff] (!%p2278_p3) }
 0x512   : > { %1735 = vst [vmem:[#allocation5 + $0x38] sm:$0xff] %v1719_v52  ;;  %v2817_v44 = vpop.eup (!%p2278_p3), %2816  ;;  %v1916_v52 = vld [vmem:[%s3810_s6 + $0x40] sm:$0xff] (!%p2278_p3)  ;;  %2828 = vrcp.f32 (!%p2278_p3), %v1784_v2  ;;  %2612 = vmatprep.subr.bf16.mxu0 (!%p2278_p3), %v2611_v54  ;;  %2636 = vmatprep.subr.bf16.mxu1 (!%p2278_p3), %v2611_v54 }
 0x513   : > { %1733 = vst [vmem:[#allocation5 + $0x28] sm:$0xff] %v1717_v50  ;;  %1859 = vperm.xlu1 (!%p2278_p3), %2809, %v2815_v20   ;;  %v2819_v50 = vpop.eup (!%p2278_p3), %2818  ;;  %v2615_v16 = vpack.c.bf16 (!%p2278_p3), %v1917_v40, %v1916_v52  ;;  %2830 = vrcp.f32 (!%p2278_p3), %v1793_v28  ;;  %2614 = vmatpush3.bf16.msra.mxu0 (!%p2278_p3), %v2611_v54 }
 0x514   : > { %v2821_v38 = vpop.eup (!%p2278_p3), %2820  ;;  %2832 = vrcp.f32 (!%p2278_p3), %v1785_v30  ;;  %2644 = vmatpush3.bf16.msra.mxu1 (!%p2278_p3), %v2611_v54 }
 0x515   : > { %v2537_v47 = vpop.f32.mrb[24].mxu1  ;;  %1854 = vperm.xlu0 (!%p2278_p3), %2808, %v2817_v44   ;;  %2616 = vmatprep.subr.bf16.mxu0 (!%p2278_p3), %v2615_v16 }
 0x516   : > { %v1722_v31 = vadd.f32 %v2537_v47, %v1593_v4  ;;  %v1681_v57 = vpop.f32.mrb[25].mxu1  ;;  %v1918_v4 = vld [vmem:[%s3810_s6 + $0x50] sm:$0xff] (!%p2278_p3)  ;;  %2637 = vmatprep.subr.bf16.mxu1 (!%p2278_p3), %v2615_v16 }
 0x517   : > { %v1720_v34 = vadd.f32 %v1681_v57, %v1591_v18  ;;  %v2538_v22 = vpop.f32.mrb[26].mxu1  ;;  %v1919_v18 = vld [vmem:[%s3810_s6 + $0x58] sm:$0xff] (!%p2278_p3)  ;;  %1864 = vperm.xlu1 (!%p2278_p3), %2809, %v2819_v50   ;;  %v1794_v47 = vld [vmem:[#allocation4 + $0x70] sm:$0xff] (!%p2278_p3)  ;;  %2618 = vmatpush3.bf16.msra.mxu0 (!%p2278_p3), %v2615_v16 }
 0x518   : > { %1738 = vst [vmem:[#allocation5 + $0x50] sm:$0xff] %v1722_v31  ;;  %v1723_v9 = vadd.f32 %v2538_v22, %v1594_v39  ;;  %v1684_v41 = vpop.f32.mrb[27].mxu1  ;;  %v2823_v39 = vpop.eup (!%p2278_p3), %2822  ;;  %v1786_v31 = vld [vmem:[#allocation4 + $0x30] sm:$0xff] (!%p2278_p3)  ;;  %2834 = vrcp.f32 (!%p2278_p3), %v1794_v47  ;;  %v1921_v22 = vld [vmem:[%s3810_s6 + $0x68] sm:$0xff] (!%p2278_p3)  ;;  %2645 = vmatpush3.bf16.msra.mxu1 (!%p2278_p3), %v2615_v16  ;;  %v1768_v59 = vld [vmem:[#allocation5 + $0x20] sm:$0xff] (!%p2278_p3) }
 0x519   : > { %1736 = vst [vmem:[#allocation5 + $0x40] sm:$0xff] %v1720_v34  ;;  %v1721_v17 = vadd.f32 %v1684_v41, %v1592_v13  ;;  %1824 = vperm.xlu0 (!%p2278_p3), %2808, %v2821_v38   ;;  %v2825_v57 = vpop.eup (!%p2278_p3), %2824  ;;  %v2619_v13 = vpack.c.bf16 (!%p2278_p3), %v1919_v18, %v1918_v4  ;;  %v1920_v34 = vld [vmem:[%s3810_s6 + $0x60] sm:$0xff] (!%p2278_p3)  ;;  %2836 = vrcp.f32 (!%p2278_p3), %v1786_v31  ;;  %v1770_v50 = vld [vmem:[#allocation5 + $0x30] sm:$0xff] (!%p2278_p3)  ;;  %v1771_v47 = vld [vmem:[#allocation5 + $0x38] sm:$0xff] (!%p2278_p3) }
 0x51a   : > { %1739 = vst [vmem:[#allocation5 + $0x58] sm:$0xff] %v1723_v9  ;;  %v1795_v9 = vld [vmem:[#allocation4 + $0x78] sm:$0xff] (!%p2278_p3)  ;;  %v1769_v2 = vld [vmem:[#allocation5 + $0x28] sm:$0xff] (!%p2278_p3) }
 0x51b   : > { %1737 = vst [vmem:[#allocation5 + $0x48] sm:$0xff] %v1721_v17  ;;  %1869 = vperm.xlu1 (!%p2278_p3), %2809, %v2823_v39   ;;  %v2827_v41 = vpop.eup (!%p2278_p3), %2826  ;;  %2620 = vmatprep.subr.bf16.mxu0 (!%p2278_p3), %v2619_v13  ;;  %v2623_v17 = vpack.c.bf16 (!%p2278_p3), %v1921_v22, %v1920_v34  ;;  %2838 = vrcp.f32 (!%p2278_p3), %v1795_v9  ;;  %v2279_v34 = vld [vmem:[%s3811_s7] ss:$0 sm:$0xff] (!%p2278_p3) }
 0x51c   : > { %v2829_v8 = vpop.eup (!%p2278_p3), %2828  ;;  %2638 = vmatprep.subr.bf16.mxu1 (!%p2278_p3), %v2619_v13  ;;  %2840 = vrcp.f32 (!%p2278_p3), %v1787_v42  ;;  %2622 = vmatpush3.bf16.msra.mxu0 (!%p2278_p3), %v2619_v13 }
 0x51d   : > { %v2541_v32 = vpop.f32.mrb[28].mxu1  ;;  %1763 = sbr.rel (%p2278_p3) target bundleno = 1671 (0x687), region = 60  ;;  %1829 = vperm.xlu0 (!%p2278_p3), %2808, %v2825_v57   ;;  %v2831_v25 = vpop.eup (!%p2278_p3), %2830  ;;  %2624 = vmatprep.subr.bf16.mxu0 (!%p2278_p3), %v2623_v17 }
 0x51e   : > { %v1726_v53 = vadd.f32 %v2541_v32, %v1597_v24  ;;  %v1697_v15 = vpop.f32.mrb[29].mxu1  ;;  %v2833_v61 = vpop.eup (!%p2278_p3), %2832  ;;  %2646 = vmatpush3.bf16.msra.mxu1 (!%p2278_p3), %v2619_v13  ;;  %v2627_v24 = vpack.c.bf16 (!%p2278_p3), %v1923_v43, %v1922_v45 }
 0x51f   : > { %v1724_v55 = vadd.f32 %v1697_v15, %v1595_v62  ;;  %v2542_v3 = vpop.f32.mrb[30].mxu1  ;;  %1874 = vperm.xlu1 (!%p2278_p3), %2809, %v2827_v41   ;;  %2639 = vmatprep.subr.bf16.mxu1 (!%p2278_p3), %v2623_v17  ;;  %v1765_v15 = vld [vmem:[#allocation5 + $0x8] sm:$0xff] (!%p2278_p3)  ;;  %v1774_v21 = vld [vmem:[#allocation5 + $0x50] sm:$0xff] (!%p2278_p3) }
 0x520   : > { %1742 = vst [vmem:[#allocation5 + $0x70] sm:$0xff] %v1726_v53  ;;  %v1727_v51 = vadd.f32 %v2542_v3, %v1598_v5  ;;  %v1700_v63 = vpop.f32.mrb[31].mxu1  ;;  %2626 = vmatpush3.bf16.msra.mxu0 (!%p2278_p3), %v2623_v17  ;;  %v1772_v58 = vld [vmem:[#allocation5 + $0x40] sm:$0xff] (!%p2278_p3) }
 0x521   : > { %1740 = vst [vmem:[#allocation5 + $0x60] sm:$0xff] %v1724_v55  ;;  %v1725_v6 = vadd.f32 %v1700_v63, %v1596_v35  ;;  %1834 = vperm.xlu0 (!%p2278_p3), %2808, %v2829_v8   ;;  %2628 = vmatprep.subr.bf16.mxu0 (!%p2278_p3), %v2627_v24  ;;  %v1764_v35 = vld [vmem:[#allocation5] sm:$0xff] (!%p2278_p3)  ;;  %v1775_v12 = vld [vmem:[#allocation5 + $0x58] sm:$0xff] (!%p2278_p3) }
 0x522   : > { %1743 = vst [vmem:[#allocation5 + $0x78] sm:$0xff] %v1727_v51  ;;  %v2835_v62 = vpop.eup (!%p2278_p3), %2834  ;;  %2647 = vmatpush3.bf16.msra.mxu1 (!%p2278_p3), %v2623_v17 }
 0x523   : > { %1741 = vst [vmem:[#allocation5 + $0x68] sm:$0xff] %v1725_v6  ;;  %1879 = vperm.xlu1 (!%p2278_p3), %2809, %v2831_v25   ;;  %v2837_v32 = vpop.eup (!%p2278_p3), %2836  ;;  %2640 = vmatprep.subr.bf16.mxu1 (!%p2278_p3), %v2627_v24  ;;  %v1773_v6 = vld [vmem:[#allocation5 + $0x48] sm:$0xff] (!%p2278_p3) }
 0x524   : > { %2630 = vmatpush3.bf16.msra.mxu0 %v2627_v24 }
 0x525   : > { %1839 = vperm.xlu0 %2808, %v2833_v61   ;;  %v2839_v5 = vpop.eup %2838 }
 0x526   : > { %v2841_v53 = vpop.eup %2840  ;;  %2648 = vmatpush3.bf16.msra.mxu1 %v2627_v24 }
 0x527   : > { %1884 = vperm.xlu1 %2809, %v2835_v62   ;;  %v1778_v28 = vld [vmem:[#allocation5 + $0x70] sm:$0xff] }
 0x528   : > { %v1776_v60 = vld [vmem:[#allocation5 + $0x60] sm:$0xff] }
 0x529   : > { %1844 = vperm.xlu0 %2808, %v2837_v32   ;;  %v1779_v18 = vld [vmem:[#allocation5 + $0x78] sm:$0xff] }
 0x52a   : > { %v1777_v20 = vld [vmem:[#allocation5 + $0x68] sm:$0xff] }
 0x52b   : > { %1889 = vperm.xlu1 %2809, %v2839_v5  }
 0x52d   : > { %1849 = vperm.xlu0 %2808, %v2841_v53  }
 0x58e   : > { %v1820_v55 = vpop.permute.xlu1 %1819 }
 0x58f   : > { %v1893_v3 = vmul.f32 %v1820_v55, %v1765_v15 }
 0x590   : > { %v1815_v51 = vpop.permute.xlu0 %1814 }
 0x591   : > { %v1892_v63 = vmul.f32 %v1815_v51, %v1764_v35 }
 0x592   : > { %v1860_v10 = vpop.permute.xlu1 %1859 }
 0x593   : > { %2575 = vmatprep.mubr.f32.mxu0 %v1892_v63  ;;  %v1901_v46 = vmul.f32 %v1860_v10, %v1773_v6 }
 0x594   : > { %v1855_v0 = vpop.permute.xlu0 %1854  ;;  %2576 = vmatmul.mubr.f32.vlgmr.msra.gmra.mrb[0].mxu0 %v1893_v3 }
 0x595   : > { %v1900_v27 = vmul.f32 %v1855_v0, %v1772_v58 }
 0x596   : > { %v1865_v48 = vpop.permute.xlu1 %1864 }
 0x597   : > { %2587 = vmatprep.mubr.f32.mxu1 %v1900_v27  ;;  %v1902_v49 = vmul.f32 %v1865_v48, %v1774_v21 }
 0x598   : > { %v1825_v14 = vpop.permute.xlu0 %1824  ;;  %2588 = vmatmul.mubr.f32.vlgmr.msra.gmra.mrb[0].mxu1 %v1901_v46 }
 0x599   : > { %v1894_v56 = vmul.f32 %v1825_v14, %v1766_v7  ;;  %2590 = vmatprep.mubr.f32.mxu1 %v1902_v49 }
 0x59a   : > { %v1870_v37 = vpop.permute.xlu1 %1869 }
 0x59b   : > { %2578 = vmatprep.mubr.f32.mxu0 %v1894_v56  ;;  %v1903_v36 = vmul.f32 %v1870_v37, %v1775_v12 }
 0x59c   : > { %v1830_v29 = vpop.permute.xlu0 %1829 }
 0x59d   : > { %v1895_v1 = vmul.f32 %v1830_v29, %v1767_v26  ;;  %2591 = vmatmul.mubr.f32.gmra.mrb[2].mxu1 %v1903_v36 }
 0x59e   : > { %v1875_v19 = vpop.permute.xlu1 %1874 }
 0x59f   : > { %2579 = vmatmul.mubr.f32.gmra.mrb[2].mxu0 %v1895_v1  ;;  %v1904_v11 = vmul.f32 %v1875_v19, %v1776_v60 }
 0x5a0   : > { %v1835_v33 = vpop.permute.xlu0 %1834 }
 0x5a1   : > { %v1896_v23 = vmul.f32 %v1835_v33, %v1768_v59  ;;  %2593 = vmatprep.mubr.f32.mxu1 %v1904_v11 }
 0x5a2   : > { %v1880_v44 = vpop.permute.xlu1 %1879 }
 0x5a3   : > { %2581 = vmatprep.mubr.f32.mxu0 %v1896_v23  ;;  %v1905_v54 = vmul.f32 %v1880_v44, %v1777_v20 }
 0x5a4   : > { %v1840_v52 = vpop.permute.xlu0 %1839 }
 0x5a5   : > { %v1897_v40 = vmul.f32 %v1840_v52, %v1769_v2  ;;  %2594 = vmatmul.mubr.f32.gmra.mrb[4].mxu1 %v1905_v54 }
 0x5a6   : > { %v1885_v30 = vpop.permute.xlu1 %1884 }
 0x5a7   : > { %2582 = vmatmul.mubr.f32.gmra.mrb[4].mxu0 %v1897_v40  ;;  %v1906_v38 = vmul.f32 %v1885_v30, %v1778_v28 }
 0x5a8   : > { %v1845_v16 = vpop.permute.xlu0 %1844 }
 0x5a9   : > { %v1898_v4 = vmul.f32 %v1845_v16, %v1770_v50  ;;  %2596 = vmatprep.mubr.f32.mxu1 %v1906_v38 }
 0x5aa   : > { %v1890_v39 = vpop.permute.xlu1 %1889 }
 0x5ab   : > { %2584 = vmatprep.mubr.f32.mxu0 %v1898_v4  ;;  %v1907_v31 = vmul.f32 %v1890_v39, %v1779_v18 }
 0x5ac   : > { %v1850_v57 = vpop.permute.xlu0 %1849 }
 0x5ad   : > { %v1899_v13 = vmul.f32 %v1850_v57, %v1771_v47  ;;  %2597 = vmatmul.mubr.f32.gmra.mrb[6].mxu1 %v1907_v31 }
 0x5af   : > { %2585 = vmatmul.mubr.f32.gmra.mrb[6].mxu0 %v1899_v13 }
 0x667   : > { %v2577_v22 = vpop.f32.mrb[0].mxu0 }
 0x668   : > { %v2003_v9 = vadd.f32 %v2577_v22, %v2279_v34  ;;  %v1997_v41 = vpop.f32.mrb[1].mxu0 }
 0x669   : > { %v1998_v42 = vadd.f32 %v2279_v34, %v1997_v41 }
 0x66a   : > { %2077 = vst [vmem:[%s3112_s27 + $0x8] sm:$0xff] %v2003_v9 }
 0x66b   : > { %2076 = vst [vmem:[%s3112_s27] sm:$0xff] %v1998_v42  ;;  %v2589_v8 = vpop.f32.mrb[0].mxu1 }
 0x66c   : > { %v2043_v17 = vadd.f32 %v2589_v8, %v2279_v34  ;;  %v2037_v45 = vpop.f32.mrb[1].mxu1 }
 0x66d   : > { %v2038_v43 = vadd.f32 %v2279_v34, %v2037_v45 }
 0x66e   : > { %2085 = vst [vmem:[%s3112_s27 + $0x48] sm:$0xff] %v2043_v17 }
 0x66f   : > { %2084 = vst [vmem:[%s3112_s27 + $0x40] sm:$0xff] %v2038_v43 }
 0x670   : > { %v2592_v25 = vpop.f32.mrb[2].mxu1 }
 0x671   : > { %v2053_v24 = vadd.f32 %v2592_v25, %v2279_v34  ;;  %v2047_v62 = vpop.f32.mrb[3].mxu1 }
 0x672   : > { %v2580_v61 = vpop.f32.mrb[2].mxu0  ;;  %v2048_v53 = vadd.f32 %v2279_v34, %v2047_v62 }
 0x673   : > { %v2013_v32 = vadd.f32 %v2580_v61, %v2279_v34  ;;  %v2007_v5 = vpop.f32.mrb[3].mxu0  ;;  %2087 = vst [vmem:[%s3112_s27 + $0x58] sm:$0xff] %v2053_v24 }
 0x674   : > { %v2008_v15 = vadd.f32 %v2279_v34, %v2007_v5  ;;  %2086 = vst [vmem:[%s3112_s27 + $0x50] sm:$0xff] %v2048_v53 }
 0x675   : > { %2079 = vst [vmem:[%s3112_s27 + $0x18] sm:$0xff] %v2013_v32 }
 0x676   : > { %2078 = vst [vmem:[%s3112_s27 + $0x10] sm:$0xff] %v2008_v15 }
 0x678   : > { %v2595_v35 = vpop.f32.mrb[4].mxu1 }
 0x679   : > { %v2063_v3 = vadd.f32 %v2595_v35, %v2279_v34  ;;  %v2057_v51 = vpop.f32.mrb[5].mxu1 }
 0x67a   : > { %v2583_v55 = vpop.f32.mrb[4].mxu0  ;;  %v2058_v58 = vadd.f32 %v2279_v34, %v2057_v51 }
 0x67b   : > { %v2023_v63 = vadd.f32 %v2583_v55, %v2279_v34  ;;  %v2017_v6 = vpop.f32.mrb[5].mxu0  ;;  %2089 = vst [vmem:[%s3112_s27 + $0x68] sm:$0xff] %v2063_v3 }
 0x67c   : > { %v2018_v10 = vadd.f32 %v2279_v34, %v2017_v6  ;;  %2088 = vst [vmem:[%s3112_s27 + $0x60] sm:$0xff] %v2058_v58 }
 0x67d   : > { %2081 = vst [vmem:[%s3112_s27 + $0x28] sm:$0xff] %v2023_v63 }
 0x67e   : > { %2080 = vst [vmem:[%s3112_s27 + $0x20] sm:$0xff] %v2018_v10 }
 0x680   : > { %v2598_v46 = vpop.f32.mrb[6].mxu1 }
 0x681   : > { %v2073_v27 = vadd.f32 %v2598_v46, %v2279_v34  ;;  %v2067_v21 = vpop.f32.mrb[7].mxu1 }
 0x682   : > { %v2586_v0 = vpop.f32.mrb[6].mxu0  ;;  %v2068_v49 = vadd.f32 %v2279_v34, %v2067_v21 }
 0x683   : > { %v2033_v7 = vadd.f32 %v2586_v0, %v2279_v34  ;;  %v2027_v48 = vpop.f32.mrb[7].mxu0  ;;  %2091 = vst [vmem:[%s3112_s27 + $0x78] sm:$0xff] %v2073_v27 }
 0x684   : > { %v2028_v14 = vadd.f32 %v2279_v34, %v2027_v48  ;;  %2090 = vst [vmem:[%s3112_s27 + $0x70] sm:$0xff] %v2068_v49 }
 0x685   : > { %2083 = vst [vmem:[%s3112_s27 + $0x38] sm:$0xff] %v2033_v7 }
 0x686   : > { %2082 = vst [vmem:[%s3112_s27 + $0x30] sm:$0xff] %v2028_v14 }
 0x687 PF: > { %s2282_s9 = sshll.u32 %s2936_s10, 5  ;;  %s2108_s22 = sshll.u32 %s3112_s27, 4  ;;  %s3737_s22 = int_to_ptr.vmem [resolvable:$true] %s2108_s22 }
 0x688   : > { %s2105_s30 = sadd.s32 %s2282_s9, %s3093_s16  ;;  %s3834_s13 = sand.u32 1, %s2920_s28  }
 0x689   : > { %s2283_s19 = sshll.u32 %s2105_s30, 7  ;;  %s3746_s17 = scalar_lea.sflag [#allocation7], %s3834_s13 }
 0x68a   : > { %s3742_s12 = scalar_lea.hbm %s3812_s8, %s2283_s19  ;;  %s2842_s18 = scalar_lea.vmem %s3737_s22, 2048 }
 0x68b   : > { %p2843_p4 = scmp.ne.s32.totalorder %s3737_s22, %s2842_s18  ;;  %s2958_s27 = smov [#allocation6]  }
 0x68c   : > { %s2846_s10 = sshll.u32 %s2958_s27, 4  ;;  %s2847_s10 = int_to_ptr.vmem [resolvable:$false] %s2846_s10 }
 0x68d   : > { %p2844_p5 = pnand %p2843_p4, %p3068_p6  ;;  %s2848_s16 = scalar_lea.vmem %s2847_s10, 4096 }
 0x68e   : > { %p2849_p9 = scmp.lt.s32.totalorder %s3737_s22, %s2847_s10  ;;  %p2850_p10 = scmp.lt.s32.totalorder %s2848_s16, %s2842_s18 }
 0x68f   : > { %p2845_p8 = pneg %p2844_p5 }
 0x690   : > { %p2851_p11 = por %p2850_p10, %p2849_p9 }
 0x692   : > { %p2852_p12 = pnand %p2851_p11, %p2845_p8 }
 0x694   : > { %2855 = shalt.err (!%p2852_p12)
}
 0x695   : > { %s2856_s21 = scalar_lea.hbm %s3742_s12, 2048  ;;  %s2860_s23 = scalar_lea.hbm %s3812_s8, 8192 }
 0x696   : > { %p2857_p13 = scmp.ne.s32.totalorder %s3742_s12, %s2856_s21  ;;  %p2861_p2 = scmp.lt.u32.totalorder %s3742_s12, %s3812_s8 }
 0x697   : > { %p2862_p3 = scmp.lt.u32.totalorder %s2860_s23, %s2856_s21  ;;  %p2864_p5 = scmp.lt.u32.totalorder %s2856_s21, %s3742_s12 }
 0x698   : > { %p2858_p0 = pnand %p2857_p13, %p3068_p6 }
 0x699   : > { %p2863_p4 = por %p2862_p3, %p2861_p2 }
 0x69a   : > { %p2859_p1 = pneg %p2858_p0 }
 0x69b   : > { %p2865_p8 = por %p2864_p5, %p2863_p4 }
 0x69d   : > { %p2866_p9 = pnand %p2865_p8, %p2859_p1 }
 0x69f   : > { %2869 = shalt.err (!%p2866_p9)
}
 0x6a0   : > { %s2959_s9 = smov 128   ;;  %s2960_s30 = smov 8  }
 0x6a1   : > { %2649 = dma.vmem_to_hbm [thread:$0]  (%p3068_p6), %s3737_s22, 2048, %s3742_s12, %s3746_s17, %s2959_s9, %s2959_s9, %s2960_s30  }
 0x6a2 PF: > { %s3835_s19 = sld [smem:[#allocation9_spill]]  ;;  %p2655_p10 = scmp.ge.s32.totalorder %s2952_s14, 2 }
 0x6a4   : > { %p2652_p11 = pnand %p2655_p10, %p3075_p7 }
 0x6a8   : > { %s2123_s11 = sand.u32 1, %s3835_s19  }
 0x6a9   : > { %s2124_s13 = scalar_lea.sflag [#allocation7], %s2123_s11 }
 0x6aa   : > { %2911 = dma.done.wait (!%p2652_p11), %s2124_s13, 2048  }
 0x6ab   : > { %2913 = vsyncadd (!%p2652_p11), %s2124_s13, 4294965248  ;;  %s21_s14 = sadd.s32 1, %s2952_s14   ;;  %s3837_s18 = sld [smem:[#allocation10_spill]] }
 0x6ac   : > { %p18_p12 = scmp.ge.s32.totalorder %s21_s14, 10   ;;  %s3838_s29 = sld [smem:[#allocation18_spill]] }
 0x6ad   : > { %s3839_s30 = sld [smem:[#allocation11_spill]]  ;;  %s3840_s9 = sld [smem:[#allocation12_spill]] }
 0x6ae   : > { %s3841_s10 = sld [smem:[#allocation13_spill]]  ;;  %s3842_s11 = sld [smem:[#allocation14_spill]] }
 0x6af   : > { %s3843_s12 = sld [smem:[#allocation15_spill]]  ;;  %s3844_s13 = sld [smem:[#allocation17_spill]] }
 0x6b0   : > { %s3845_s27 = smov %s2920_s28  ;;  %20 = sbr.rel (!%p18_p12) target bundleno = 6 (0x6), region = 98 }
 0x6b1   : > { %s3846_s28 = smov %s3837_s18 }
 0x6b7   :  { %2129 = vsyncpa [#allocation7], 1 }
 0x6b8   :  { %2131 = vsyncpa [#allocation7 + $0x1], 1 }

</bundles_post_ra>
